<compile_context>
chip_gen: v6e
topology: v6e:2x2x1
jax: 0.10.0
libtpu: 0.0.40
codegen_flags: <defaults>
</compile_context>

<pallas_src>
import jax
import jax.numpy as jnp
from jax.experimental import pallas as pl
from jax.experimental.pallas import tpu as pltpu


def _rnn_kernel(x_ref, wih_ref, whh_ref, b_ref, wout_ref, bout_ref,
                y_ref, hn_ref, cn_ref, gates_x_sc, h_all_sc):
    """Fused LSTM + output Linear, one invocation for the whole sequence.

    x_ref:      (T*BP, E)   bf16  embedded input, time-major (row = t*BP + b)
    wih_ref:    (E, 4H)     bf16  W_ih^T, gate columns in (i, f, o, g) order
    whh_ref:    (H, 4H)     bf16  W_hh^T, gate columns in (i, f, o, g) order
    b_ref:      (1, 4H)     f32   b_ih + b_hh, (i, f, o, g) order
    wout_ref:   (H, VP)     bf16  W_out^T (vocab padded to lane multiple)
    bout_ref:   (1, VP)     f32   b_out (padded)
    y_ref:      (T*BP, VP)  f32   logits, time-major
    hn_ref:     (BP, H)     f32   final hidden state
    cn_ref:     (BP, H)     f32   final cell state
    gates_x_sc: (T*BP, 4H)  f32   VMEM scratch for the hoisted x-projection
    h_all_sc:   (T*BP, H)   f32   VMEM scratch holding h_t for every step
    """
    BP, H = hn_ref.shape
    T = x_ref.shape[0] // BP

    # (1) Hoisted input-to-hidden projection for ALL time steps: one MXU call
    #     with M = T*BP.  Result is parked in VMEM scratch, NOT held live as a
    #     value across the recurrence (avoids ~32 vregs of residency).
    gates_x_sc[...] = (jnp.dot(x_ref[...], wih_ref[...],
                               preferred_element_type=jnp.float32)
                       + b_ref[...])                          # (T*BP, 4H) f32

    # (2) Sequential recurrence, fully unrolled (static, small T). h/c carried
    #     as values (1 vreg each); per-step inputs (gates_x slice, W_hh) are
    #     read from VMEM so live ranges stay bounded within the step.
    h = jnp.zeros((BP, H), jnp.float32)
    c = jnp.zeros((BP, H), jnp.float32)
    for t in range(T):
        gates = (gates_x_sc[t * BP:(t + 1) * BP, :]
                 + jnp.dot(h.astype(jnp.bfloat16), whh_ref[...],
                           preferred_element_type=jnp.float32))    # (BP, 4H)
        # Gate columns were pre-permuted to (i, f, o, g): one contiguous
        # sigmoid slab (3H) + one tanh slab (H).  sigmoid(x) = 0.5*tanh(x/2)+0.5
        # costs a single EUP pass per element.
        sig = 0.5 * jnp.tanh(0.5 * gates[:, 0:3 * H]) + 0.5        # (BP, 3H)
        i_g = sig[:, 0 * H:1 * H]
        f_g = sig[:, 1 * H:2 * H]
        o_g = sig[:, 2 * H:3 * H]
        g_g = jnp.tanh(gates[:, 3 * H:4 * H])
        c = f_g * c + i_g * g_g
        h = o_g * jnp.tanh(c)
        # f32 scratch -> exactly one aligned (8,128) vreg store per step.
        h_all_sc[t * BP:(t + 1) * BP, :] = h

    hn_ref[...] = h
    cn_ref[...] = c

    # (3) Batched, lane-dense output projection: single bulk cast to bf16, one
    #     (T*BP, H) @ (H, VP) matmul and one unmasked (T*BP, VP) store.
    y_ref[...] = (jnp.dot(h_all_sc[...].astype(jnp.bfloat16), wout_ref[...],
                          preferred_element_type=jnp.float32)
                  + bout_ref[...]).astype(y_ref.dtype)


def _permute_gate_cols(w, H):
    """Reorder the last-dim gate blocks from PyTorch (i,f,g,o) to (i,f,o,g)."""
    i, f, g, o = jnp.split(w, 4, axis=-1)
    return jnp.concatenate([i, f, o, g], axis=-1)


def _vmem_budget_bytes(T, BP, E, H, VP):
    """Actual VMEM footprint of all kernel buffers (no grid => no dbl-buffer)."""
    bf16, f32 = 2, 4
    buf = (T * BP * E * bf16        # x
           + E * 4 * H * bf16       # w_ih^T
           + H * 4 * H * bf16       # w_hh^T
           + 4 * H * f32            # bias
           + H * VP * bf16          # w_out^T
           + VP * f32               # b_out
           + T * BP * VP * f32      # y
           + 2 * BP * H * f32       # hn, cn
           + T * BP * 4 * H * f32   # gates_x scratch
           + T * BP * H * f32)      # h_all scratch
    # 2x headroom + fixed slack for compiler-internal scratch; keep within the
    # smallest physical VMEM (v7x: 64 MiB).
    return min(64 * 1024 * 1024, 2 * buf + 4 * 1024 * 1024)


@jax.jit
def rnn_forward(tokens, params):
    """Equivalent of RNN.forward(x, h_prev=None).

    tokens: (B, T) int32
    returns: logits (B, T, V), (h_n (1, B, H), c_n (1, B, H))
    """
    embed_table = params["embed"]          # (V, E)
    w_ih_t = params["w_ih_t"]              # (E, 4H)  PyTorch gate order
    w_hh_t = params["w_hh_t"]              # (H, 4H)  PyTorch gate order
    b = params["b"]                        # (1, 4H)  == b_ih + b_hh
    w_out_t = params["w_out_t"]            # (H, V)
    b_out = params["b_out"]                # (1, V)

    B, T = tokens.shape
    E = embed_table.shape[1]
    H = w_hh_t.shape[0]
    V = w_out_t.shape[1]

    BP = ((B + 7) // 8) * 8          # pad batch to a full sublane (8)
    VP = ((V + 127) // 128) * 128    # pad vocab to a full lane tile (128)

    # Embedding lookup (data-dependent gather -> plain JAX), done directly in
    # time-major order by transposing the tiny token matrix, not the embedded
    # activations. Pad batch, flatten to (T*BP, E), cast to bf16 for the MXU.
    emb_tm = jnp.take(embed_table, tokens.T, axis=0)            # (T, B, E)
    emb_tm = jnp.pad(emb_tm, ((0, 0), (0, BP - B), (0, 0)))     # (T, BP, E)
    x_flat = emb_tm.reshape(T * BP, E).astype(jnp.bfloat16)     # (T*BP, E)

    # Permute gate columns (i,f,g,o) -> (i,f,o,g) so the kernel applies one
    # contiguous sigmoid slab + one tanh slab.
    wih = _permute_gate_cols(w_ih_t, H).astype(jnp.bfloat16)             # (E, 4H)
    whh = _permute_gate_cols(w_hh_t, H).astype(jnp.bfloat16)             # (H, 4H)
    bias = _permute_gate_cols(b, H)                                      # (1, 4H)
    wout = jnp.pad(w_out_t, ((0, 0), (0, VP - V))).astype(jnp.bfloat16)  # (H, VP)
    bout = jnp.pad(b_out, ((0, 0), (0, VP - V)))                         # (1, VP)

    vmem_spec = pl.BlockSpec(memory_space=pltpu.MemorySpace.VMEM)

    y_pad, h_pad, c_pad = pl.pallas_call(
        _rnn_kernel,
        out_shape=(
            jax.ShapeDtypeStruct((T * BP, VP), jnp.float32),
            jax.ShapeDtypeStruct((BP, H), jnp.float32),
            jax.ShapeDtypeStruct((BP, H), jnp.float32),
        ),
        in_specs=[vmem_spec] * 6,
        out_specs=(vmem_spec, vmem_spec, vmem_spec),
        scratch_shapes=[
            pltpu.VMEM((T * BP, 4 * H), jnp.float32),   # gates_x
            pltpu.VMEM((T * BP, H), jnp.float32),       # h_all
        ],
        compiler_params=pltpu.CompilerParams(
            vmem_limit_bytes=_vmem_budget_bytes(T, BP, E, H, VP),
        ),
    )(x_flat, wih, whh, bias, wout, bout)

    # Un-pad and restore PyTorch layouts.
    logits_tm = y_pad.reshape(T, BP, VP)[:, :B, :V]    # (T, B, V)
    logits = jnp.transpose(logits_tm, (1, 0, 2))       # (B, T, V)
    h_n = h_pad[:B][None, :, :]                        # (1, B, H)
    c_n = c_pad[:B][None, :, :]                        # (1, B, H)
    return logits, (h_n, c_n)


def init_params(key, n_embed, hidden_dim, vocab_size):
    """Deterministic init matching PyTorch module parameter shapes."""
    k_emb, k_wih, k_whh, k_bih, k_bhh, k_wo, k_bo = jax.random.split(key, 7)
    bound = 1.0 / jnp.sqrt(hidden_dim)
    embed = jax.random.normal(k_emb, (vocab_size, n_embed), jnp.float32)
    w_ih = jax.random.uniform(k_wih, (4 * hidden_dim, n_embed), jnp.float32,
                              -bound, bound)
    w_hh = jax.random.uniform(k_whh, (4 * hidden_dim, hidden_dim), jnp.float32,
                              -bound, bound)
    b_ih = jax.random.uniform(k_bih, (4 * hidden_dim,), jnp.float32, -bound, bound)
    b_hh = jax.random.uniform(k_bhh, (4 * hidden_dim,), jnp.float32, -bound, bound)
    w_out = jax.random.uniform(k_wo, (vocab_size, hidden_dim), jnp.float32,
                               -bound, bound)
    b_out = jax.random.uniform(k_bo, (vocab_size,), jnp.float32, -bound, bound)
    return {
        "embed": embed,
        "w_ih_t": w_ih.T,                       # (E, 4H)  PyTorch gate order
        "w_hh_t": w_hh.T,                       # (H, 4H)  PyTorch gate order
        "b": (b_ih + b_hh)[None, :],            # (1, 4H)
        "w_out_t": w_out.T,                     # (H, V)
        "b_out": b_out[None, :],                # (1, V)
    }


if __name__ == "__main__":
    n_embed = 64
    hidden_dim = 128
    vocab_size = 65
    B, T = 2, 8

    key = jax.random.PRNGKey(0)
    k_param, k_tok = jax.random.split(key)
    params = init_params(k_param, n_embed, hidden_dim, vocab_size)
    tokens = jax.random.randint(k_tok, (B, T), 0, vocab_size, dtype=jnp.int32)

    logits, (h_n, c_n) = rnn_forward(tokens, params)
    jax.block_until_ready((logits, h_n, c_n))

    assert logits.shape == (B, T, vocab_size)
    assert h_n.shape == (1, B, hidden_dim)
    assert c_n.shape == (1, B, hidden_dim)
    assert bool(jnp.all(jnp.isfinite(logits)))
    print("KERNEL_OK")
</pallas_src>

<mosaic_0001>
module attributes {stable_mosaic.version = 11 : i64} {
  func.func @_rnn_kernel(%arg0: memref<64x64xbf16, #tpu.memory_space<vmem>>, %arg1: memref<64x512xbf16, #tpu.memory_space<vmem>>, %arg2: memref<128x512xbf16, #tpu.memory_space<vmem>>, %arg3: memref<1x512xf32, #tpu.memory_space<vmem>>, %arg4: memref<128x128xbf16, #tpu.memory_space<vmem>>, %arg5: memref<1x128xf32, #tpu.memory_space<vmem>>, %arg6: memref<64x128xf32, #tpu.memory_space<vmem>>, %arg7: memref<8x128xf32, #tpu.memory_space<vmem>>, %arg8: memref<8x128xf32, #tpu.memory_space<vmem>>, %arg9: memref<64x512xf32, #tpu.memory_space<vmem>>, %arg10: memref<64x128xf32, #tpu.memory_space<vmem>>) attributes {dimension_semantics = [], scalar_prefetch = 0 : i64, scratch_operands = 2 : i64, tpu.core_type = #tpu.core_type<tc>} {
    %c0 = arith.constant 0 : index
    %c0_0 = arith.constant 0 : index
    %0 = vector.load %arg0[%c0, %c0_0] : memref<64x64xbf16, #tpu.memory_space<vmem>>, vector<64x64xbf16>
    %c0_1 = arith.constant 0 : index
    %c0_2 = arith.constant 0 : index
    %1 = vector.load %arg1[%c0_1, %c0_2] : memref<64x512xbf16, #tpu.memory_space<vmem>>, vector<64x512xbf16>
    %cst = arith.constant dense<0.000000e+00> : vector<64x512xf32>
    %2 = tpu.matmul %0, %1, %cst {dimension_numbers = #tpu.dot_dimension_numbers<[1], [0], [0], [1], [0, 0, 1, 1], [], []>} : vector<64x64xbf16>, vector<64x512xbf16>, vector<64x512xf32> -> vector<64x512xf32>
    %c0_3 = arith.constant 0 : index
    %c0_4 = arith.constant 0 : index
    %3 = vector.load %arg3[%c0_3, %c0_4] : memref<1x512xf32, #tpu.memory_space<vmem>>, vector<1x512xf32>
    %4 = vector.broadcast %3 : vector<1x512xf32> to vector<64x512xf32>
    %5 = arith.addf %2, %4 : vector<64x512xf32>
    %c0_5 = arith.constant 0 : index
    %c0_6 = arith.constant 0 : index
    %6 = vector.load %arg9[%c0_5, %c0_6] : memref<64x512xf32, #tpu.memory_space<vmem>>, vector<64x512xf32>
    tpu.vector_store %arg9[%c0_5, %c0_6], %5 {strides = array<i32>} : memref<64x512xf32, #tpu.memory_space<vmem>>, vector<64x512xf32>,
    %cst_7 = arith.constant 0.000000e+00 : f32
    %7 = vector.broadcast %cst_7 : f32 to vector<8x128xf32>
    %cst_8 = arith.constant 0.000000e+00 : f32
    %8 = vector.broadcast %cst_8 : f32 to vector<8x128xf32>
    %c0_9 = arith.constant 0 : index
    %c0_10 = arith.constant 0 : index
    %9 = vector.load %arg9[%c0_9, %c0_10] : memref<64x512xf32, #tpu.memory_space<vmem>>, vector<8x512xf32>
    %10 = arith.truncf %7 : vector<8x128xf32> to vector<8x128xbf16>
    %c0_11 = arith.constant 0 : index
    %c0_12 = arith.constant 0 : index
    %11 = vector.load %arg2[%c0_11, %c0_12] : memref<128x512xbf16, #tpu.memory_space<vmem>>, vector<128x512xbf16>
    %cst_13 = arith.constant dense<0.000000e+00> : vector<8x512xf32>
    %12 = tpu.matmul %10, %11, %cst_13 {dimension_numbers = #tpu.dot_dimension_numbers<[1], [0], [0], [1], [0, 0, 1, 1], [], []>} : vector<8x128xbf16>, vector<128x512xbf16>, vector<8x512xf32> -> vector<8x512xf32>
    %13 = arith.addf %9, %12 : vector<8x512xf32>
    %14 = vector.extract_strided_slice %13 {offsets = [0, 0], sizes = [8, 384], strides = [1, 1]} : vector<8x512xf32> to vector<8x384xf32>
    %cst_14 = arith.constant 5.000000e-01 : f32
    %15 = vector.broadcast %cst_14 : f32 to vector<8x384xf32>
    %16 = arith.mulf %15, %14 : vector<8x384xf32>
    %17 = math.tanh %16 : vector<8x384xf32>
    %cst_15 = arith.constant 5.000000e-01 : f32
    %18 = vector.broadcast %cst_15 : f32 to vector<8x384xf32>
    %19 = arith.mulf %18, %17 : vector<8x384xf32>
    %cst_16 = arith.constant 5.000000e-01 : f32
    %20 = vector.broadcast %cst_16 : f32 to vector<8x384xf32>
    %21 = arith.addf %19, %20 : vector<8x384xf32>
    %22 = vector.extract_strided_slice %21 {offsets = [0, 0], sizes = [8, 128], strides = [1, 1]} : vector<8x384xf32> to vector<8x128xf32>
    %23 = vector.extract_strided_slice %21 {offsets = [0, 128], sizes = [8, 128], strides = [1, 1]} : vector<8x384xf32> to vector<8x128xf32>
    %24 = vector.extract_strided_slice %21 {offsets = [0, 256], sizes = [8, 128], strides = [1, 1]} : vector<8x384xf32> to vector<8x128xf32>
    %25 = vector.extract_strided_slice %13 {offsets = [0, 384], sizes = [8, 128], strides = [1, 1]} : vector<8x512xf32> to vector<8x128xf32>
    %26 = math.tanh %25 : vector<8x128xf32>
    %27 = arith.mulf %23, %8 : vector<8x128xf32>
    %28 = arith.mulf %22, %26 : vector<8x128xf32>
    %29 = arith.addf %27, %28 : vector<8x128xf32>
    %30 = math.tanh %29 : vector<8x128xf32>
    %31 = arith.mulf %24, %30 : vector<8x128xf32>
    %c0_17 = arith.constant 0 : index
    %c0_18 = arith.constant 0 : index
    %32 = vector.load %arg10[%c0_17, %c0_18] : memref<64x128xf32, #tpu.memory_space<vmem>>, vector<8x128xf32>
    tpu.vector_store %arg10[%c0_17, %c0_18], %31 {strides = array<i32>} : memref<64x128xf32, #tpu.memory_space<vmem>>, vector<8x128xf32>,
    %c8 = arith.constant 8 : index
    %c0_19 = arith.constant 0 : index
    %33 = vector.load %arg9[%c8, %c0_19] : memref<64x512xf32, #tpu.memory_space<vmem>>, vector<8x512xf32>
    %34 = arith.truncf %31 : vector<8x128xf32> to vector<8x128xbf16>
    %c0_20 = arith.constant 0 : index
    %c0_21 = arith.constant 0 : index
    %35 = vector.load %arg2[%c0_20, %c0_21] : memref<128x512xbf16, #tpu.memory_space<vmem>>, vector<128x512xbf16>
    %cst_22 = arith.constant dense<0.000000e+00> : vector<8x512xf32>
    %36 = tpu.matmul %34, %35, %cst_22 {dimension_numbers = #tpu.dot_dimension_numbers<[1], [0], [0], [1], [0, 0, 1, 1], [], []>} : vector<8x128xbf16>, vector<128x512xbf16>, vector<8x512xf32> -> vector<8x512xf32>
    %37 = arith.addf %33, %36 : vector<8x512xf32>
    %38 = vector.extract_strided_slice %37 {offsets = [0, 0], sizes = [8, 384], strides = [1, 1]} : vector<8x512xf32> to vector<8x384xf32>
    %cst_23 = arith.constant 5.000000e-01 : f32
    %39 = vector.broadcast %cst_23 : f32 to vector<8x384xf32>
    %40 = arith.mulf %39, %38 : vector<8x384xf32>
    %41 = math.tanh %40 : vector<8x384xf32>
    %cst_24 = arith.constant 5.000000e-01 : f32
    %42 = vector.broadcast %cst_24 : f32 to vector<8x384xf32>
    %43 = arith.mulf %42, %41 : vector<8x384xf32>
    %cst_25 = arith.constant 5.000000e-01 : f32
    %44 = vector.broadcast %cst_25 : f32 to vector<8x384xf32>
    %45 = arith.addf %43, %44 : vector<8x384xf32>
    %46 = vector.extract_strided_slice %45 {offsets = [0, 0], sizes = [8, 128], strides = [1, 1]} : vector<8x384xf32> to vector<8x128xf32>
    %47 = vector.extract_strided_slice %45 {offsets = [0, 128], sizes = [8, 128], strides = [1, 1]} : vector<8x384xf32> to vector<8x128xf32>
    %48 = vector.extract_strided_slice %45 {offsets = [0, 256], sizes = [8, 128], strides = [1, 1]} : vector<8x384xf32> to vector<8x128xf32>
    %49 = vector.extract_strided_slice %37 {offsets = [0, 384], sizes = [8, 128], strides = [1, 1]} : vector<8x512xf32> to vector<8x128xf32>
    %50 = math.tanh %49 : vector<8x128xf32>
    %51 = arith.mulf %47, %29 : vector<8x128xf32>
    %52 = arith.mulf %46, %50 : vector<8x128xf32>
    %53 = arith.addf %51, %52 : vector<8x128xf32>
    %54 = math.tanh %53 : vector<8x128xf32>
    %55 = arith.mulf %48, %54 : vector<8x128xf32>
    %c8_26 = arith.constant 8 : index
    %c0_27 = arith.constant 0 : index
    %56 = vector.load %arg10[%c8_26, %c0_27] : memref<64x128xf32, #tpu.memory_space<vmem>>, vector<8x128xf32>
    tpu.vector_store %arg10[%c8_26, %c0_27], %55 {strides = array<i32>} : memref<64x128xf32, #tpu.memory_space<vmem>>, vector<8x128xf32>,
    %c16 = arith.constant 16 : index
    %c0_28 = arith.constant 0 : index
    %57 = vector.load %arg9[%c16, %c0_28] : memref<64x512xf32, #tpu.memory_space<vmem>>, vector<8x512xf32>
    %58 = arith.truncf %55 : vector<8x128xf32> to vector<8x128xbf16>
    %c0_29 = arith.constant 0 : index
    %c0_30 = arith.constant 0 : index
    %59 = vector.load %arg2[%c0_29, %c0_30] : memref<128x512xbf16, #tpu.memory_space<vmem>>, vector<128x512xbf16>
    %cst_31 = arith.constant dense<0.000000e+00> : vector<8x512xf32>
    %60 = tpu.matmul %58, %59, %cst_31 {dimension_numbers = #tpu.dot_dimension_numbers<[1], [0], [0], [1], [0, 0, 1, 1], [], []>} : vector<8x128xbf16>, vector<128x512xbf16>, vector<8x512xf32> -> vector<8x512xf32>
    %61 = arith.addf %57, %60 : vector<8x512xf32>
    %62 = vector.extract_strided_slice %61 {offsets = [0, 0], sizes = [8, 384], strides = [1, 1]} : vector<8x512xf32> to vector<8x384xf32>
    %cst_32 = arith.constant 5.000000e-01 : f32
    %63 = vector.broadcast %cst_32 : f32 to vector<8x384xf32>
    %64 = arith.mulf %63, %62 : vector<8x384xf32>
    %65 = math.tanh %64 : vector<8x384xf32>
    %cst_33 = arith.constant 5.000000e-01 : f32
    %66 = vector.broadcast %cst_33 : f32 to vector<8x384xf32>
    %67 = arith.mulf %66, %65 : vector<8x384xf32>
    %cst_34 = arith.constant 5.000000e-01 : f32
    %68 = vector.broadcast %cst_34 : f32 to vector<8x384xf32>
    %69 = arith.addf %67, %68 : vector<8x384xf32>
    %70 = vector.extract_strided_slice %69 {offsets = [0, 0], sizes = [8, 128], strides = [1, 1]} : vector<8x384xf32> to vector<8x128xf32>
    %71 = vector.extract_strided_slice %69 {offsets = [0, 128], sizes = [8, 128], strides = [1, 1]} : vector<8x384xf32> to vector<8x128xf32>
    %72 = vector.extract_strided_slice %69 {offsets = [0, 256], sizes = [8, 128], strides = [1, 1]} : vector<8x384xf32> to vector<8x128xf32>
    %73 = vector.extract_strided_slice %61 {offsets = [0, 384], sizes = [8, 128], strides = [1, 1]} : vector<8x512xf32> to vector<8x128xf32>
    %74 = math.tanh %73 : vector<8x128xf32>
    %75 = arith.mulf %71, %53 : vector<8x128xf32>
    %76 = arith.mulf %70, %74 : vector<8x128xf32>
    %77 = arith.addf %75, %76 : vector<8x128xf32>
    %78 = math.tanh %77 : vector<8x128xf32>
    %79 = arith.mulf %72, %78 : vector<8x128xf32>
    %c16_35 = arith.constant 16 : index
    %c0_36 = arith.constant 0 : index
    %80 = vector.load %arg10[%c16_35, %c0_36] : memref<64x128xf32, #tpu.memory_space<vmem>>, vector<8x128xf32>
    tpu.vector_store %arg10[%c16_35, %c0_36], %79 {strides = array<i32>} : memref<64x128xf32, #tpu.memory_space<vmem>>, vector<8x128xf32>,
    %c24 = arith.constant 24 : index
    %c0_37 = arith.constant 0 : index
    %81 = vector.load %arg9[%c24, %c0_37] : memref<64x512xf32, #tpu.memory_space<vmem>>, vector<8x512xf32>
    %82 = arith.truncf %79 : vector<8x128xf32> to vector<8x128xbf16>
    %c0_38 = arith.constant 0 : index
    %c0_39 = arith.constant 0 : index
    %83 = vector.load %arg2[%c0_38, %c0_39] : memref<128x512xbf16, #tpu.memory_space<vmem>>, vector<128x512xbf16>
    %cst_40 = arith.constant dense<0.000000e+00> : vector<8x512xf32>
    %84 = tpu.matmul %82, %83, %cst_40 {dimension_numbers = #tpu.dot_dimension_numbers<[1], [0], [0], [1], [0, 0, 1, 1], [], []>} : vector<8x128xbf16>, vector<128x512xbf16>, vector<8x512xf32> -> vector<8x512xf32>
    %85 = arith.addf %81, %84 : vector<8x512xf32>
    %86 = vector.extract_strided_slice %85 {offsets = [0, 0], sizes = [8, 384], strides = [1, 1]} : vector<8x512xf32> to vector<8x384xf32>
    %cst_41 = arith.constant 5.000000e-01 : f32
    %87 = vector.broadcast %cst_41 : f32 to vector<8x384xf32>
    %88 = arith.mulf %87, %86 : vector<8x384xf32>
    %89 = math.tanh %88 : vector<8x384xf32>
    %cst_42 = arith.constant 5.000000e-01 : f32
    %90 = vector.broadcast %cst_42 : f32 to vector<8x384xf32>
    %91 = arith.mulf %90, %89 : vector<8x384xf32>
    %cst_43 = arith.constant 5.000000e-01 : f32
    %92 = vector.broadcast %cst_43 : f32 to vector<8x384xf32>
    %93 = arith.addf %91, %92 : vector<8x384xf32>
    %94 = vector.extract_strided_slice %93 {offsets = [0, 0], sizes = [8, 128], strides = [1, 1]} : vector<8x384xf32> to vector<8x128xf32>
    %95 = vector.extract_strided_slice %93 {offsets = [0, 128], sizes = [8, 128], strides = [1, 1]} : vector<8x384xf32> to vector<8x128xf32>
    %96 = vector.extract_strided_slice %93 {offsets = [0, 256], sizes = [8, 128], strides = [1, 1]} : vector<8x384xf32> to vector<8x128xf32>
    %97 = vector.extract_strided_slice %85 {offsets = [0, 384], sizes = [8, 128], strides = [1, 1]} : vector<8x512xf32> to vector<8x128xf32>
    %98 = math.tanh %97 : vector<8x128xf32>
    %99 = arith.mulf %95, %77 : vector<8x128xf32>
    %100 = arith.mulf %94, %98 : vector<8x128xf32>
    %101 = arith.addf %99, %100 : vector<8x128xf32>
    %102 = math.tanh %101 : vector<8x128xf32>
    %103 = arith.mulf %96, %102 : vector<8x128xf32>
    %c24_44 = arith.constant 24 : index
    %c0_45 = arith.constant 0 : index
    %104 = vector.load %arg10[%c24_44, %c0_45] : memref<64x128xf32, #tpu.memory_space<vmem>>, vector<8x128xf32>
    tpu.vector_store %arg10[%c24_44, %c0_45], %103 {strides = array<i32>} : memref<64x128xf32, #tpu.memory_space<vmem>>, vector<8x128xf32>,
    %c32 = arith.constant 32 : index
    %c0_46 = arith.constant 0 : index
    %105 = vector.load %arg9[%c32, %c0_46] : memref<64x512xf32, #tpu.memory_space<vmem>>, vector<8x512xf32>
    %106 = arith.truncf %103 : vector<8x128xf32> to vector<8x128xbf16>
    %c0_47 = arith.constant 0 : index
    %c0_48 = arith.constant 0 : index
    %107 = vector.load %arg2[%c0_47, %c0_48] : memref<128x512xbf16, #tpu.memory_space<vmem>>, vector<128x512xbf16>
    %cst_49 = arith.constant dense<0.000000e+00> : vector<8x512xf32>
    %108 = tpu.matmul %106, %107, %cst_49 {dimension_numbers = #tpu.dot_dimension_numbers<[1], [0], [0], [1], [0, 0, 1, 1], [], []>} : vector<8x128xbf16>, vector<128x512xbf16>, vector<8x512xf32> -> vector<8x512xf32>
    %109 = arith.addf %105, %108 : vector<8x512xf32>
    %110 = vector.extract_strided_slice %109 {offsets = [0, 0], sizes = [8, 384], strides = [1, 1]} : vector<8x512xf32> to vector<8x384xf32>
    %cst_50 = arith.constant 5.000000e-01 : f32
    %111 = vector.broadcast %cst_50 : f32 to vector<8x384xf32>
    %112 = arith.mulf %111, %110 : vector<8x384xf32>
    %113 = math.tanh %112 : vector<8x384xf32>
    %cst_51 = arith.constant 5.000000e-01 : f32
    %114 = vector.broadcast %cst_51 : f32 to vector<8x384xf32>
    %115 = arith.mulf %114, %113 : vector<8x384xf32>
    %cst_52 = arith.constant 5.000000e-01 : f32
    %116 = vector.broadcast %cst_52 : f32 to vector<8x384xf32>
    %117 = arith.addf %115, %116 : vector<8x384xf32>
    %118 = vector.extract_strided_slice %117 {offsets = [0, 0], sizes = [8, 128], strides = [1, 1]} : vector<8x384xf32> to vector<8x128xf32>
    %119 = vector.extract_strided_slice %117 {offsets = [0, 128], sizes = [8, 128], strides = [1, 1]} : vector<8x384xf32> to vector<8x128xf32>
    %120 = vector.extract_strided_slice %117 {offsets = [0, 256], sizes = [8, 128], strides = [1, 1]} : vector<8x384xf32> to vector<8x128xf32>
    %121 = vector.extract_strided_slice %109 {offsets = [0, 384], sizes = [8, 128], strides = [1, 1]} : vector<8x512xf32> to vector<8x128xf32>
    %122 = math.tanh %121 : vector<8x128xf32>
    %123 = arith.mulf %119, %101 : vector<8x128xf32>
    %124 = arith.mulf %118, %122 : vector<8x128xf32>
    %125 = arith.addf %123, %124 : vector<8x128xf32>
    %126 = math.tanh %125 : vector<8x128xf32>
    %127 = arith.mulf %120, %126 : vector<8x128xf32>
    %c32_53 = arith.constant 32 : index
    %c0_54 = arith.constant 0 : index
    %128 = vector.load %arg10[%c32_53, %c0_54] : memref<64x128xf32, #tpu.memory_space<vmem>>, vector<8x128xf32>
    tpu.vector_store %arg10[%c32_53, %c0_54], %127 {strides = array<i32>} : memref<64x128xf32, #tpu.memory_space<vmem>>, vector<8x128xf32>,
    %c40 = arith.constant 40 : index
    %c0_55 = arith.constant 0 : index
    %129 = vector.load %arg9[%c40, %c0_55] : memref<64x512xf32, #tpu.memory_space<vmem>>, vector<8x512xf32>
    %130 = arith.truncf %127 : vector<8x128xf32> to vector<8x128xbf16>
    %c0_56 = arith.constant 0 : index
    %c0_57 = arith.constant 0 : index
    %131 = vector.load %arg2[%c0_56, %c0_57] : memref<128x512xbf16, #tpu.memory_space<vmem>>, vector<128x512xbf16>
    %cst_58 = arith.constant dense<0.000000e+00> : vector<8x512xf32>
    %132 = tpu.matmul %130, %131, %cst_58 {dimension_numbers = #tpu.dot_dimension_numbers<[1], [0], [0], [1], [0, 0, 1, 1], [], []>} : vector<8x128xbf16>, vector<128x512xbf16>, vector<8x512xf32> -> vector<8x512xf32>
    %133 = arith.addf %129, %132 : vector<8x512xf32>
    %134 = vector.extract_strided_slice %133 {offsets = [0, 0], sizes = [8, 384], strides = [1, 1]} : vector<8x512xf32> to vector<8x384xf32>
    %cst_59 = arith.constant 5.000000e-01 : f32
    %135 = vector.broadcast %cst_59 : f32 to vector<8x384xf32>
    %136 = arith.mulf %135, %134 : vector<8x384xf32>
    %137 = math.tanh %136 : vector<8x384xf32>
    %cst_60 = arith.constant 5.000000e-01 : f32
    %138 = vector.broadcast %cst_60 : f32 to vector<8x384xf32>
    %139 = arith.mulf %138, %137 : vector<8x384xf32>
    %cst_61 = arith.constant 5.000000e-01 : f32
    %140 = vector.broadcast %cst_61 : f32 to vector<8x384xf32>
    %141 = arith.addf %139, %140 : vector<8x384xf32>
    %142 = vector.extract_strided_slice %141 {offsets = [0, 0], sizes = [8, 128], strides = [1, 1]} : vector<8x384xf32> to vector<8x128xf32>
    %143 = vector.extract_strided_slice %141 {offsets = [0, 128], sizes = [8, 128], strides = [1, 1]} : vector<8x384xf32> to vector<8x128xf32>
    %144 = vector.extract_strided_slice %141 {offsets = [0, 256], sizes = [8, 128], strides = [1, 1]} : vector<8x384xf32> to vector<8x128xf32>
    %145 = vector.extract_strided_slice %133 {offsets = [0, 384], sizes = [8, 128], strides = [1, 1]} : vector<8x512xf32> to vector<8x128xf32>
    %146 = math.tanh %145 : vector<8x128xf32>
    %147 = arith.mulf %143, %125 : vector<8x128xf32>
    %148 = arith.mulf %142, %146 : vector<8x128xf32>
    %149 = arith.addf %147, %148 : vector<8x128xf32>
    %150 = math.tanh %149 : vector<8x128xf32>
    %151 = arith.mulf %144, %150 : vector<8x128xf32>
    %c40_62 = arith.constant 40 : index
    %c0_63 = arith.constant 0 : index
    %152 = vector.load %arg10[%c40_62, %c0_63] : memref<64x128xf32, #tpu.memory_space<vmem>>, vector<8x128xf32>
    tpu.vector_store %arg10[%c40_62, %c0_63], %151 {strides = array<i32>} : memref<64x128xf32, #tpu.memory_space<vmem>>, vector<8x128xf32>,
    %c48 = arith.constant 48 : index
    %c0_64 = arith.constant 0 : index
    %153 = vector.load %arg9[%c48, %c0_64] : memref<64x512xf32, #tpu.memory_space<vmem>>, vector<8x512xf32>
    %154 = arith.truncf %151 : vector<8x128xf32> to vector<8x128xbf16>
    %c0_65 = arith.constant 0 : index
    %c0_66 = arith.constant 0 : index
    %155 = vector.load %arg2[%c0_65, %c0_66] : memref<128x512xbf16, #tpu.memory_space<vmem>>, vector<128x512xbf16>
    %cst_67 = arith.constant dense<0.000000e+00> : vector<8x512xf32>
    %156 = tpu.matmul %154, %155, %cst_67 {dimension_numbers = #tpu.dot_dimension_numbers<[1], [0], [0], [1], [0, 0, 1, 1], [], []>} : vector<8x128xbf16>, vector<128x512xbf16>, vector<8x512xf32> -> vector<8x512xf32>
    %157 = arith.addf %153, %156 : vector<8x512xf32>
    %158 = vector.extract_strided_slice %157 {offsets = [0, 0], sizes = [8, 384], strides = [1, 1]} : vector<8x512xf32> to vector<8x384xf32>
    %cst_68 = arith.constant 5.000000e-01 : f32
    %159 = vector.broadcast %cst_68 : f32 to vector<8x384xf32>
    %160 = arith.mulf %159, %158 : vector<8x384xf32>
    %161 = math.tanh %160 : vector<8x384xf32>
    %cst_69 = arith.constant 5.000000e-01 : f32
    %162 = vector.broadcast %cst_69 : f32 to vector<8x384xf32>
    %163 = arith.mulf %162, %161 : vector<8x384xf32>
    %cst_70 = arith.constant 5.000000e-01 : f32
    %164 = vector.broadcast %cst_70 : f32 to vector<8x384xf32>
    %165 = arith.addf %163, %164 : vector<8x384xf32>
    %166 = vector.extract_strided_slice %165 {offsets = [0, 0], sizes = [8, 128], strides = [1, 1]} : vector<8x384xf32> to vector<8x128xf32>
    %167 = vector.extract_strided_slice %165 {offsets = [0, 128], sizes = [8, 128], strides = [1, 1]} : vector<8x384xf32> to vector<8x128xf32>
    %168 = vector.extract_strided_slice %165 {offsets = [0, 256], sizes = [8, 128], strides = [1, 1]} : vector<8x384xf32> to vector<8x128xf32>
    %169 = vector.extract_strided_slice %157 {offsets = [0, 384], sizes = [8, 128], strides = [1, 1]} : vector<8x512xf32> to vector<8x128xf32>
    %170 = math.tanh %169 : vector<8x128xf32>
    %171 = arith.mulf %167, %149 : vector<8x128xf32>
    %172 = arith.mulf %166, %170 : vector<8x128xf32>
    %173 = arith.addf %171, %172 : vector<8x128xf32>
    %174 = math.tanh %173 : vector<8x128xf32>
    %175 = arith.mulf %168, %174 : vector<8x128xf32>
    %c48_71 = arith.constant 48 : index
    %c0_72 = arith.constant 0 : index
    %176 = vector.load %arg10[%c48_71, %c0_72] : memref<64x128xf32, #tpu.memory_space<vmem>>, vector<8x128xf32>
    tpu.vector_store %arg10[%c48_71, %c0_72], %175 {strides = array<i32>} : memref<64x128xf32, #tpu.memory_space<vmem>>, vector<8x128xf32>,
    %c56 = arith.constant 56 : index
    %c0_73 = arith.constant 0 : index
    %177 = vector.load %arg9[%c56, %c0_73] : memref<64x512xf32, #tpu.memory_space<vmem>>, vector<8x512xf32>
    %178 = arith.truncf %175 : vector<8x128xf32> to vector<8x128xbf16>
    %c0_74 = arith.constant 0 : index
    %c0_75 = arith.constant 0 : index
    %179 = vector.load %arg2[%c0_74, %c0_75] : memref<128x512xbf16, #tpu.memory_space<vmem>>, vector<128x512xbf16>
    %cst_76 = arith.constant dense<0.000000e+00> : vector<8x512xf32>
    %180 = tpu.matmul %178, %179, %cst_76 {dimension_numbers = #tpu.dot_dimension_numbers<[1], [0], [0], [1], [0, 0, 1, 1], [], []>} : vector<8x128xbf16>, vector<128x512xbf16>, vector<8x512xf32> -> vector<8x512xf32>
    %181 = arith.addf %177, %180 : vector<8x512xf32>
    %182 = vector.extract_strided_slice %181 {offsets = [0, 0], sizes = [8, 384], strides = [1, 1]} : vector<8x512xf32> to vector<8x384xf32>
    %cst_77 = arith.constant 5.000000e-01 : f32
    %183 = vector.broadcast %cst_77 : f32 to vector<8x384xf32>
    %184 = arith.mulf %183, %182 : vector<8x384xf32>
    %185 = math.tanh %184 : vector<8x384xf32>
    %cst_78 = arith.constant 5.000000e-01 : f32
    %186 = vector.broadcast %cst_78 : f32 to vector<8x384xf32>
    %187 = arith.mulf %186, %185 : vector<8x384xf32>
    %cst_79 = arith.constant 5.000000e-01 : f32
    %188 = vector.broadcast %cst_79 : f32 to vector<8x384xf32>
    %189 = arith.addf %187, %188 : vector<8x384xf32>
    %190 = vector.extract_strided_slice %189 {offsets = [0, 0], sizes = [8, 128], strides = [1, 1]} : vector<8x384xf32> to vector<8x128xf32>
    %191 = vector.extract_strided_slice %189 {offsets = [0, 128], sizes = [8, 128], strides = [1, 1]} : vector<8x384xf32> to vector<8x128xf32>
    %192 = vector.extract_strided_slice %189 {offsets = [0, 256], sizes = [8, 128], strides = [1, 1]} : vector<8x384xf32> to vector<8x128xf32>
    %193 = vector.extract_strided_slice %181 {offsets = [0, 384], sizes = [8, 128], strides = [1, 1]} : vector<8x512xf32> to vector<8x128xf32>
    %194 = math.tanh %193 : vector<8x128xf32>
    %195 = arith.mulf %191, %173 : vector<8x128xf32>
    %196 = arith.mulf %190, %194 : vector<8x128xf32>
    %197 = arith.addf %195, %196 : vector<8x128xf32>
    %198 = math.tanh %197 : vector<8x128xf32>
    %199 = arith.mulf %192, %198 : vector<8x128xf32>
    %c56_80 = arith.constant 56 : index
    %c0_81 = arith.constant 0 : index
    %200 = vector.load %arg10[%c56_80, %c0_81] : memref<64x128xf32, #tpu.memory_space<vmem>>, vector<8x128xf32>
    tpu.vector_store %arg10[%c56_80, %c0_81], %199 {strides = array<i32>} : memref<64x128xf32, #tpu.memory_space<vmem>>, vector<8x128xf32>,
    %c0_82 = arith.constant 0 : index
    %c0_83 = arith.constant 0 : index
    %201 = vector.load %arg7[%c0_82, %c0_83] : memref<8x128xf32, #tpu.memory_space<vmem>>, vector<8x128xf32>
    tpu.vector_store %arg7[%c0_82, %c0_83], %199 {strides = array<i32>} : memref<8x128xf32, #tpu.memory_space<vmem>>, vector<8x128xf32>,
    %c0_84 = arith.constant 0 : index
    %c0_85 = arith.constant 0 : index
    %202 = vector.load %arg8[%c0_84, %c0_85] : memref<8x128xf32, #tpu.memory_space<vmem>>, vector<8x128xf32>
    tpu.vector_store %arg8[%c0_84, %c0_85], %197 {strides = array<i32>} : memref<8x128xf32, #tpu.memory_space<vmem>>, vector<8x128xf32>,
    %c0_86 = arith.constant 0 : index
    %c0_87 = arith.constant 0 : index
    %203 = vector.load %arg10[%c0_86, %c0_87] : memref<64x128xf32, #tpu.memory_space<vmem>>, vector<64x128xf32>
    %204 = arith.truncf %203 : vector<64x128xf32> to vector<64x128xbf16>
    %c0_88 = arith.constant 0 : index
    %c0_89 = arith.constant 0 : index
    %205 = vector.load %arg4[%c0_88, %c0_89] : memref<128x128xbf16, #tpu.memory_space<vmem>>, vector<128x128xbf16>
    %cst_90 = arith.constant dense<0.000000e+00> : vector<64x128xf32>
    %206 = tpu.matmul %204, %205, %cst_90 {dimension_numbers = #tpu.dot_dimension_numbers<[1], [0], [0], [1], [0, 0, 1, 1], [], []>} : vector<64x128xbf16>, vector<128x128xbf16>, vector<64x128xf32> -> vector<64x128xf32>
    %c0_91 = arith.constant 0 : index
    %c0_92 = arith.constant 0 : index
    %207 = vector.load %arg5[%c0_91, %c0_92] : memref<1x128xf32, #tpu.memory_space<vmem>>, vector<1x128xf32>
    %208 = vector.broadcast %207 : vector<1x128xf32> to vector<64x128xf32>
    %209 = arith.addf %206, %208 : vector<64x128xf32>
    %c0_93 = arith.constant 0 : index
    %c0_94 = arith.constant 0 : index
    %210 = vector.load %arg6[%c0_93, %c0_94] : memref<64x128xf32, #tpu.memory_space<vmem>>, vector<64x128xf32>
    tpu.vector_store %arg6[%c0_93, %c0_94], %209 {strides = array<i32>} : memref<64x128xf32, #tpu.memory_space<vmem>>, vector<64x128xf32>,
    return
  }
}

</mosaic_0001>

<bundles_post_ra>
// kernel: rnn_forward.1
= control target key start
LH: loop header
LB: loop body
LE: loop exit
PB: predicated region body
PF: predicated region fallthrough
CT: control target
= control target key end

     0   :  { %v4479_v1 = vmov 0   ;;  %vm173_vm0 = vcmask 523264   ;;  %v53_v53 = vlaneseq  ;;  %s4470_s1 = inlined_call_operand.vmem [shape: bf16[64,512], index: 1, kind: input, shape index: {}]   ;;  %s4471_s2 = inlined_call_operand.vmem [shape: bf16[128,512], index: 2, kind: input, shape index: {}]   ;;  %s4472_s0 = inlined_call_operand.vmem [shape: bf16[64,64], index: 0, kind: input, shape index: {}]   ;;  %s4473_s3 = inlined_call_operand.vmem [shape: f32[1,512], index: 3, kind: input, shape index: {}]   ;;  %s4474_s4 = inlined_call_operand.vmem [shape: bf16[128,128], index: 4, kind: input, shape index: {}]   ;;  %s4475_s8 = inlined_call_operand.vmem [shape: f32[8,128], index: 8, kind: output, shape index: {2}]   ;;  %s4476_s5 = inlined_call_operand.vmem [shape: f32[1,128], index: 5, kind: input, shape index: {}]   ;;  %s4477_s6 = inlined_call_operand.vmem [shape: f32[64,128], index: 6, kind: output, shape index: {0}]   ;;  %s4478_s7 = inlined_call_operand.vmem [shape: f32[8,128], index: 7, kind: output, shape index: {1}]  }
   0x1   :  { %v3279_v0 = vld [vmem:[%s4470_s1 + $0x64] ss:$16 sps:$4 sm:$0xff]   ;;  %218 = vmatprep.mubr.bf16.mxu1 %v4479_v1  ;;  %592 = vmatprep.mubr.bf16.mxu0 %v4479_v1  ;;  %v3283_v3 = vld [vmem:[%s4470_s1 + $0x60] ss:$16 sps:$4 sm:$0xff]   ;;  %v3306_v17 = vld [vmem:[%s4470_s1 + $0x6c] ss:$16 sps:$4 sm:$0xff]  }
   0x2   :  { %v3569_v2 = vld [vmem:[%s4471_s2 + $0xe4] ss:$16 sps:$4 sm:$0xff]   ;;  %194 = vmatprep.subr.bf16.mxu1 %v3279_v0  ;;  %v3577_v4 = vld [vmem:[%s4471_s2 + $0xe0] ss:$16 sps:$4 sm:$0xff]   ;;  %v3304_v20 = vld [vmem:[%s4470_s1 + $0x68] ss:$16 sps:$4 sm:$0xff]  }
   0x3   :  { %560 = vmatprep.subr.bf16.mxu0 %v3569_v2  ;;  %v3285_v5 = vld [vmem:[%s4470_s1 + $0x44] ss:$16 sps:$4 sm:$0xff]   ;;  %195 = vmatpush1.bf16.msra.mxu1 %v3283_v3  ;;  %v3289_v7 = vld [vmem:[%s4470_s1 + $0x40] ss:$16 sps:$4 sm:$0xff]   ;;  %v3316_v23 = vld [vmem:[%s4470_s1 + $0x4c] ss:$16 sps:$4 sm:$0xff]  }
   0x4   :  { %561 = vmatpush1.bf16.msra.mxu0 %v3577_v4  ;;  %v3587_v6 = vld [vmem:[%s4471_s2 + $0xc4] ss:$16 sps:$4 sm:$0xff]   ;;  %196 = vmatprep.subr.bf16.mxu1 %v3285_v5  ;;  %v3595_v8 = vld [vmem:[%s4471_s2 + $0xc0] ss:$16 sps:$4 sm:$0xff]   ;;  %v3314_v25 = vld [vmem:[%s4470_s1 + $0x48] ss:$16 sps:$4 sm:$0xff]  }
   0x5   :  { %562 = vmatprep.subr.bf16.mxu0 %v3587_v6  ;;  %v3291_v9 = vld [vmem:[%s4470_s1 + $0x24] ss:$16 sps:$4 sm:$0xff]   ;;  %v3295_v11 = vld [vmem:[%s4470_s1 + $0x20] ss:$16 sps:$4 sm:$0xff]   ;;  %v3313_v27 = vld [vmem:[%s4472_s0 + $0x8] sm:$0xff]   ;;  %v54_v54 = vshrl.u32 %v53_v53, 7 }
   0x6   :  { %v3604_v10 = vld [vmem:[%s4471_s2 + $0xa4] ss:$16 sps:$4 sm:$0xff]   ;;  %v3612_v12 = vld [vmem:[%s4471_s2 + $0xa0] ss:$16 sps:$4 sm:$0xff]   ;;  %v3326_v28 = vld [vmem:[%s4470_s1 + $0x2c] ss:$16 sps:$4 sm:$0xff]  }
   0x7   :  { %197 = vmatpush1.bf16.msra.mxu1 %v3289_v7  ;;  %v3297_v13 = vld [vmem:[%s4470_s1 + $0x4] ss:$16 sps:$4 sm:$0xff]   ;;  %v3301_v15 = vld [vmem:[%s4470_s1] ss:$16 sps:$4 sm:$0xff]   ;;  %v3324_v31 = vld [vmem:[%s4470_s1 + $0x28] ss:$16 sps:$4 sm:$0xff]  }
   0x8   :  { %563 = vmatpush1.bf16.msra.mxu0 %v3595_v8  ;;  %198 = vmatprep.subr.bf16.mxu1 %v3291_v9  ;;  %v3622_v14 = vld [vmem:[%s4471_s2 + $0x84] ss:$16 sps:$4 sm:$0xff]   ;;  %v3631_v16 = vld [vmem:[%s4471_s2 + $0x80] ss:$16 sps:$4 sm:$0xff]   ;;  %v3330_v32 = vld [vmem:[%s4470_s1 + $0xc] ss:$16 sps:$4 sm:$0xff]  }
   0x9   :  { %564 = vmatprep.subr.bf16.mxu0 %v3604_v10  ;;  %v3640_v18 = vld [vmem:[%s4471_s2 + $0x64] ss:$16 sps:$4 sm:$0xff]   ;;  %v3652_v21 = vld [vmem:[%s4471_s2 + $0x60] ss:$16 sps:$4 sm:$0xff]   ;;  %v3328_v34 = vld [vmem:[%s4470_s1 + $0x8] ss:$16 sps:$4 sm:$0xff]  }
   0xa   :  { %v3303_v19 = vld [vmem:[%s4472_s0] sm:$0xff]   ;;  %v3719_v35 = vld [vmem:[%s4471_s2 + $0xec] ss:$16 sps:$4 sm:$0xff]   ;;  %v3323_v36 = vld [vmem:[%s4472_s0 + $0x10] sm:$0xff]   ;;  %v55_v55 = vsub.s32 0, %v54_v54  ;;  %v59_v58 = vsub.s32 1, %v54_v54 }
   0xb   :  { %199 = vmatpush1.bf16.msra.mxu1 %v3295_v11  ;;  %v3658_v22 = vld [vmem:[%s4471_s2 + $0x44] ss:$16 sps:$4 sm:$0xff]   ;;  %v3668_v24 = vld [vmem:[%s4471_s2 + $0x40] ss:$16 sps:$4 sm:$0xff]   ;;  %v3327_v37 = vld [vmem:[%s4472_s0 + $0x18] sm:$0xff]  }
   0xc   :  { %565 = vmatpush1.bf16.msra.mxu0 %v3612_v12  ;;  %200 = vmatprep.subr.bf16.mxu1 %v3297_v13  ;;  %v3678_v26 = vld [vmem:[%s4471_s2 + $0x24] ss:$16 sps:$4 sm:$0xff]   ;;  %v3689_v29 = vld [vmem:[%s4471_s2 + $0x20] ss:$16 sps:$4 sm:$0xff]   ;;  %v3745_v38 = vld [vmem:[%s4471_s2 + $0xe8] ss:$16 sps:$4 sm:$0xff]  }
   0xd   :  { %566 = vmatprep.subr.bf16.mxu0 %v3622_v14  ;;  %v3695_v30 = vld [vmem:[%s4471_s2 + $0x4] ss:$16 sps:$4 sm:$0xff]   ;;  %v3709_v33 = vld [vmem:[%s4471_s2] ss:$16 sps:$4 sm:$0xff]   ;;  %v3750_v39 = vld [vmem:[%s4471_s2 + $0xcc] ss:$16 sps:$4 sm:$0xff]  }
   0xe   :  { %v3759_v40 = vld [vmem:[%s4471_s2 + $0xc8] ss:$16 sps:$4 sm:$0xff]   ;;  %v3766_v41 = vld [vmem:[%s4471_s2 + $0xac] ss:$16 sps:$4 sm:$0xff]   ;;  %v51_v56 = vld [vmem:[%s4473_s3] sm:$0xf] }
   0xf   :  { %201 = vmatpush1.bf16.msra.mxu1 %v3301_v15  ;;  %v3774_v42 = vld [vmem:[%s4471_s2 + $0xa8] ss:$16 sps:$4 sm:$0xff]   ;;  %v3780_v43 = vld [vmem:[%s4471_s2 + $0x8c] ss:$16 sps:$4 sm:$0xff]   ;;  %v56_v60 = vrot.slane %v51_v56, %v55_v55  ;;  %v60_v62 = vrot.slane %v51_v56, %v59_v58 }
  0x10   :  { %567 = vmatpush1.bf16.msra.mxu0 %v3631_v16  ;;  %267 = vmatprep.subr.bf16.mxu1 %v3306_v17  ;;  %v3789_v44 = vld [vmem:[%s4471_s2 + $0x88] ss:$16 sps:$4 sm:$0xff]   ;;  %v3796_v45 = vld [vmem:[%s4471_s2 + $0x6c] ss:$16 sps:$4 sm:$0xff]  }
  0x11   :  { %568 = vmatprep.subr.bf16.mxu0 %v3640_v18  ;;  %v3804_v46 = vld [vmem:[%s4471_s2 + $0x68] ss:$16 sps:$4 sm:$0xff]   ;;  %v3810_v47 = vld [vmem:[%s4471_s2 + $0x4c] ss:$16 sps:$4 sm:$0xff]  }
  0x12   :  { %2969 = vmatmul.mubr.msk.bf16.vlgmr.msra.gmra.mxu1 %vm173_vm0, %v3303_v19  ;;  %v3819_v48 = vld [vmem:[%s4471_s2 + $0x48] ss:$16 sps:$4 sm:$0xff]   ;;  %v3826_v49 = vld [vmem:[%s4471_s2 + $0x2c] ss:$16 sps:$4 sm:$0xff]  }
  0x13   :  { %268 = vmatpush1.bf16.msra.mxu1 %v3304_v20  ;;  %228 = vmatprep.mubr.bf16.mxu1 %v4479_v1  ;;  %v3832_v50 = vld [vmem:[%s4471_s2 + $0x28] ss:$16 sps:$4 sm:$0xff]   ;;  %v3838_v51 = vld [vmem:[%s4471_s2 + $0xc] ss:$16 sps:$4 sm:$0xff]  }
  0x14   :  { %569 = vmatpush1.bf16.msra.mxu0 %v3652_v21  ;;  %269 = vmatprep.subr.bf16.mxu1 %v3316_v23  ;;  %v3845_v52 = vld [vmem:[%s4471_s2 + $0x8] ss:$16 sps:$4 sm:$0xff]  }
  0x15   :  { %570 = vmatprep.subr.bf16.mxu0 %v3658_v22 }
  0x17   :  { %270 = vmatpush1.bf16.msra.mxu1 %v3314_v25 }
  0x18   :  { %571 = vmatpush1.bf16.msra.mxu0 %v3668_v24  ;;  %271 = vmatprep.subr.bf16.mxu1 %v3326_v28 }
  0x19   :  { %572 = vmatprep.subr.bf16.mxu0 %v3678_v26 }
  0x1a   :  { %2970 = vmatmul.mubr.msk.bf16.gmra.mxu1 %vm173_vm0, %v3313_v27 }
  0x1b   :  { %238 = vmatprep.mubr.bf16.mxu1 %v4479_v1  ;;  %272 = vmatpush1.bf16.msra.mxu1 %v3324_v31 }
  0x1c   :  { %573 = vmatpush1.bf16.msra.mxu0 %v3689_v29  ;;  %273 = vmatprep.subr.bf16.mxu1 %v3330_v32 }
  0x1d   :  { %574 = vmatprep.subr.bf16.mxu0 %v3695_v30 }
  0x1f   :  { %274 = vmatpush1.bf16.msra.mxu1 %v3328_v34 }
  0x20   :  { %575 = vmatpush1.bf16.msra.mxu0 %v3709_v33  ;;  %601 = vmatprep.subr.bf16.mxu1 %v3719_v35 }
  0x21   :  { %862 = vmatprep.subr.bf16.mxu0 %v3569_v2 }
  0x22   :  { %2971 = vmatmul.mubr.msk.bf16.gmra.mxu1 %vm173_vm0, %v3323_v36 }
  0x23   :  { %593 = vmatmul.mubr.bf16.vlgmr.msra.gmra.mxu0 %v4479_v1  ;;  %248 = vmatprep.mubr.bf16.mxu1 %v4479_v1 }
  0x24   :  { %863 = vmatpush1.bf16.msra.mxu0 %v3577_v4  ;;  %894 = vmatprep.mubr.bf16.mxu0 %v4479_v1 }
  0x25   :  { %864 = vmatprep.subr.bf16.mxu0 %v3587_v6 }
  0x28   :  { %865 = vmatpush1.bf16.msra.mxu0 %v3595_v8 }
  0x29   :  { %866 = vmatprep.subr.bf16.mxu0 %v3604_v10 }
  0x2a   :  { %2972 = vmatmul.mubr.msk.bf16.gmra.mxu1 %vm173_vm0, %v3327_v37 }
  0x2b   :  { %291 = vmatprep.mubr.bf16.mxu1 %v4479_v1 }
  0x2c   :  { %867 = vmatpush1.bf16.msra.mxu0 %v3612_v12 }
  0x2d   :  { %868 = vmatprep.subr.bf16.mxu0 %v3622_v14 }
  0x30   :  { %869 = vmatpush1.bf16.msra.mxu0 %v3631_v16 }
  0x31   :  { %870 = vmatprep.subr.bf16.mxu0 %v3640_v18 }
  0x32   :  { %2973 = vmatmul.mubr.msk.bf16.vlgmr.msra.gmra.mxu1 %vm173_vm0, %v3303_v19 }
  0x33   :  { %602 = vmatpush1.bf16.msra.mxu1 %v3745_v38  ;;  %301 = vmatprep.mubr.bf16.mxu1 %v4479_v1 }
  0x34   :  { %603 = vmatprep.subr.bf16.mxu1 %v3750_v39  ;;  %871 = vmatpush1.bf16.msra.mxu0 %v3652_v21 }
  0x35   :  { %872 = vmatprep.subr.bf16.mxu0 %v3658_v22 }
  0x37   :  { %604 = vmatpush1.bf16.msra.mxu1 %v3759_v40 }
  0x38   :  { %605 = vmatprep.subr.bf16.mxu1 %v3766_v41  ;;  %873 = vmatpush1.bf16.msra.mxu0 %v3668_v24 }
  0x39   :  { %874 = vmatprep.subr.bf16.mxu0 %v3678_v26 }
  0x3a   :  { %2974 = vmatmul.mubr.msk.bf16.gmra.mxu1 %vm173_vm0, %v3313_v27 }
  0x3b   :  { %606 = vmatpush1.bf16.msra.mxu1 %v3774_v42  ;;  %311 = vmatprep.mubr.bf16.mxu1 %v4479_v1 }
  0x3c   :  { %607 = vmatprep.subr.bf16.mxu1 %v3780_v43  ;;  %875 = vmatpush1.bf16.msra.mxu0 %v3689_v29 }
  0x3d   :  { %876 = vmatprep.subr.bf16.mxu0 %v3695_v30 }
  0x3f   :  { %608 = vmatpush1.bf16.msra.mxu1 %v3789_v44 }
  0x40   :  { %609 = vmatprep.subr.bf16.mxu1 %v3796_v45  ;;  %877 = vmatpush1.bf16.msra.mxu0 %v3709_v33 }
  0x41   :  { %1164 = vmatprep.subr.bf16.mxu0 %v3569_v2 }
  0x42   :  { %2975 = vmatmul.mubr.msk.bf16.gmra.mxu1 %vm173_vm0, %v3323_v36 }
  0x43   :  { %610 = vmatpush1.bf16.msra.mxu1 %v3804_v46  ;;  %321 = vmatprep.mubr.bf16.mxu1 %v4479_v1 }
  0x44   :  { %611 = vmatprep.subr.bf16.mxu1 %v3810_v47 }
  0x47   :  { %612 = vmatpush1.bf16.msra.mxu1 %v3819_v48 }
  0x48   :  { %613 = vmatprep.subr.bf16.mxu1 %v3826_v49 }
  0x4a   :  { %2976 = vmatmul.mubr.msk.bf16.gmra.mxu1 %vm173_vm0, %v3327_v37 }
  0x4b   :  { %614 = vmatpush1.bf16.msra.mxu1 %v3832_v50  ;;  %633 = vmatprep.mubr.bf16.mxu1 %v4479_v1 }
  0x4c   :  { %615 = vmatprep.subr.bf16.mxu1 %v3838_v51 }
  0x4f   :  { %616 = vmatpush1.bf16.msra.mxu1 %v3845_v52 }
  0x50   :  { %903 = vmatprep.subr.bf16.mxu1 %v3719_v35 }
  0x52   :  { %634 = vmatmul.mubr.bf16.vlgmr.msra.gmra.mxu1 %v4479_v1 }
  0x53   :  { %904 = vmatpush1.bf16.msra.mxu1 %v3745_v38  ;;  %935 = vmatprep.mubr.bf16.mxu1 %v4479_v1 }
  0x54   :  { %905 = vmatprep.subr.bf16.mxu1 %v3750_v39 }
  0x57   :  { %906 = vmatpush1.bf16.msra.mxu1 %v3759_v40 }
  0x58   :  { %907 = vmatprep.subr.bf16.mxu1 %v3766_v41 }
  0x5b   :  { %908 = vmatpush1.bf16.msra.mxu1 %v3774_v42 }
  0x5c   :  { %909 = vmatprep.subr.bf16.mxu1 %v3780_v43 }
  0x5f   :  { %910 = vmatpush1.bf16.msra.mxu1 %v3789_v44 }
  0x60   :  { %911 = vmatprep.subr.bf16.mxu1 %v3796_v45 }
  0x63   :  { %912 = vmatpush1.bf16.msra.mxu1 %v3804_v46 }
  0x64   :  { %913 = vmatprep.subr.bf16.mxu1 %v3810_v47 }
  0x67   :  { %914 = vmatpush1.bf16.msra.mxu1 %v3819_v48 }
  0x68   :  { %915 = vmatprep.subr.bf16.mxu1 %v3826_v49 }
  0x6b   :  { %916 = vmatpush1.bf16.msra.mxu1 %v3832_v50 }
  0x6c   :  { %917 = vmatprep.subr.bf16.mxu1 %v3838_v51 }
  0x6f   :  { %918 = vmatpush1.bf16.msra.mxu1 %v3845_v52 }
  0x70   :  { %1205 = vmatprep.subr.bf16.mxu1 %v3719_v35 }
  0xd2   :  { %v220_v57 = vpop.f32.mrf.mxu1 }
  0xd4   :  { %v222_v59 = vpop.f32.mrf.mxu1 }
  0xd6   :  { %v224_v61 = vpop.f32.mrf.mxu1 }
  0xd7   :  { %v3872_v63 = vadd.f32 %v224_v61, %v56_v60 }
  0xd8   :  { %v226_v0 = vpop.f32.mrf.mxu1 }
  0xd9   :  { %v3874_v2 = vadd.f32 %v226_v0, %v60_v62 }
  0xda   :  { %v230_v3 = vpop.f32.mrf.mxu1 }
  0xdb   :  { %v3876_v5 = vadd.f32 %v230_v3, %v56_v60 }
  0xdc   :  { %v232_v7 = vpop.f32.mrf.mxu1 }
  0xdd   :  { %v3878_v9 = vadd.f32 %v232_v7, %v60_v62 }
  0xde   :  { %v234_v11 = vpop.f32.mrf.mxu1 }
  0xdf   :  { %v3880_v13 = vadd.f32 %v234_v11, %v56_v60 }
  0xe0   :  { %v236_v15 = vpop.f32.mrf.mxu1 }
  0xe1   :  { %4481 = vst [vmem:[#allocation4_spill] sm:$0xff] %v3880_v13  ;;  %v3882_v17 = vadd.f32 %v236_v15, %v60_v62 }
  0xe2   :  { %v240_v19 = vpop.f32.mrf.mxu1 }
  0xe3   :  { %4482 = vst [vmem:[#allocation5_spill] sm:$0xff] %v3882_v17  ;;  %v594_v20 = vpop.f32.mrf.mxu0  ;;  %v3884_v23 = vadd.f32 %v240_v19, %v56_v60  ;;  %v63_v19 = vsub.s32 2, %v54_v54 }
  0xe4   :  { %v242_v25 = vpop.f32.mrf.mxu1 }
  0xe5   :  { %4483 = vst [vmem:[#allocation6_spill] sm:$0xff] %v3884_v23  ;;  %v596_v27 = vpop.f32.mrf.mxu0  ;;  %v3886_v28 = vadd.f32 %v242_v25, %v60_v62  ;;  %v64_v1 = vrot.slane %v51_v56, %v63_v19 }
  0xe6   :  { %v244_v31 = vpop.f32.mrf.mxu1 }
  0xe7   :  { %4484 = vst [vmem:[#allocation7_spill] sm:$0xff] %v3886_v28  ;;  %v598_v32 = vpop.f32.mrf.mxu0  ;;  %v3888_v34 = vadd.f32 %v244_v31, %v56_v60  ;;  %v67_v31 = vsub.s32 3, %v54_v54 }
  0xe8   :  { %v246_v36 = vpop.f32.mrf.mxu1 }
  0xe9   :  { %4485 = vst [vmem:[#allocation8_spill] sm:$0xff] %v3888_v34  ;;  %v599_v37 = vpop.f32.mrf.mxu0  ;;  %v3890_v53 = vadd.f32 %v246_v36, %v60_v62  ;;  %v68_v36 = vrot.slane %v51_v56, %v67_v31  ;;  %v223_v56 = vadd.f32 %v222_v59, %v60_v62 }
  0xea   :  { %v250_v55 = vpop.f32.mrf.mxu1 }
  0xeb   :  { %4486 = vst [vmem:[#allocation9_spill] sm:$0xff] %v3890_v53  ;;  %v3892_v58 = vadd.f32 %v250_v55, %v56_v60  ;;  %v643_v23 = vadd.f32 %v596_v27, %v223_v56 }
  0xec   :  { %v252_v61 = vpop.f32.mrf.mxu1 }
  0xed   :  { %4487 = vst [vmem:[#allocation10_spill] sm:$0xff] %v3892_v58  ;;  %v3894_v0 = vadd.f32 %v252_v61, %v60_v62 }
  0xee   :  { %v254_v3 = vpop.f32.mrf.mxu1 }
  0xef   :  { %4488 = vst [vmem:[#allocation11_spill] sm:$0xff] %v3894_v0  ;;  %v3896_v7 = vadd.f32 %v254_v3, %v56_v60 }
  0xf0   :  { %v256_v11 = vpop.f32.mrf.mxu1 }
  0xf1   :  { %4489 = vst [vmem:[#allocation12_spill] sm:$0xff] %v3896_v7  ;;  %v3898_v15 = vadd.f32 %v256_v11, %v60_v62 }
  0xf2   :  { %v293_v25 = vpop.f32.mrf.mxu1 }
  0xf3   :  { %4490 = vst [vmem:[#allocation13_spill] sm:$0xff] %v3898_v15 }
  0xf4   :  { %v295_v32 = vpop.f32.mrf.mxu1 }
  0xf5   :  { %v296_v27 = vadd.f32 %v295_v32, %v68_v36 }
  0xf6   :  { %v297_v37 = vpop.f32.mrf.mxu1 }
  0xf7   :  { %v3900_v53 = vadd.f32 %v297_v37, %v64_v1 }
  0xf8   :  { %v299_v55 = vpop.f32.mrf.mxu1 }
  0xf9   :  { %v3902_v58 = vadd.f32 %v299_v55, %v68_v36  ;;  %v221_v55 = vadd.f32 %v220_v57, %v56_v60 }
  0xfa   :  { %v303_v61 = vpop.f32.mrf.mxu1 }
  0xfb   :  { %v3904_v0 = vadd.f32 %v303_v61, %v64_v1 }
  0xfc   :  { %v305_v3 = vpop.f32.mrf.mxu1 }
  0xfd   :  { %4491 = vst [vmem:[#allocation14_spill] sm:$0xff] %v3904_v0  ;;  %v3906_v7 = vadd.f32 %v305_v3, %v68_v36  ;;  %v642_v3 = vadd.f32 %v594_v20, %v221_v55 }
  0xfe   :  { %v307_v11 = vpop.f32.mrf.mxu1 }
  0xff   :  { %v3908_v15 = vadd.f32 %v307_v11, %v64_v1  ;;  %v647_v11 = vmul.f32 0.5, %v643_v23 }
 0x100   :  { %v309_v34 = vpop.f32.mrf.mxu1 }
 0x101   :  { %4492 = vst [vmem:[#allocation15_spill] sm:$0xff] %v3908_v15  ;;  %v3910_v54 = vadd.f32 %v309_v34, %v68_v36  ;;  %3435 = vtanh.f32 %v647_v11 }
 0x102   :  { %v313_v19 = vpop.f32.mrf.mxu1 }
 0x103   :  { %4493 = vst [vmem:[#allocation16_spill] sm:$0xff] %v3910_v54  ;;  %v3912_v28 = vadd.f32 %v313_v19, %v64_v1  ;;  %v646_v54 = vmul.f32 0.5, %v642_v3 }
 0x104   :  { %v315_v31 = vpop.f32.mrf.mxu1 }
 0x105   :  { %4494 = vst [vmem:[#allocation17_spill] sm:$0xff] %v3912_v28  ;;  %v3914_v37 = vadd.f32 %v315_v31, %v68_v36  ;;  %3437 = vtanh.f32 %v646_v54  ;;  %v294_v31 = vadd.f32 %v293_v25, %v64_v1 }
 0x106   :  { %v317_v61 = vpop.f32.mrf.mxu1 }
 0x107   :  { %v3916_v17 = vadd.f32 %v317_v61, %v64_v1 }
 0x108   :  { %v319_v13 = vpop.f32.mrf.mxu1 }
 0x109   :  { %v3918_v0 = vadd.f32 %v319_v13, %v68_v36 }
 0x10a   :  { %v323_v15 = vpop.f32.mrf.mxu1 }
 0x10b   :  { %v3920_v34 = vadd.f32 %v323_v15, %v64_v1 }
 0x10c   :  { %v325_v19 = vpop.f32.mrf.mxu1 }
 0x10d   :  { %4495 = vst [vmem:[#allocation18_spill] sm:$0xff] %v3920_v34  ;;  %v3922_v28 = vadd.f32 %v325_v19, %v68_v36 }
 0x10e   :  { %v327_v59 = vpop.f32.mrf.mxu1  ;;  %v3436_v61 = vpop.eup %3435 }
 0x10f   :  { %4496 = vst [vmem:[#allocation19_spill] sm:$0xff] %v3922_v28  ;;  %v3924_v62 = vadd.f32 %v327_v59, %v64_v1  ;;  %v653_v19 = vmul.f32 0.5, %v3436_v61 }
 0x110   :  { %v329_v57 = vpop.f32.mrf.mxu1 }
 0x111   :  { %4497 = vst [vmem:[#allocation20_spill] sm:$0xff] %v3924_v62  ;;  %v3926_v60 = vadd.f32 %v329_v57, %v68_v36  ;;  %v656_v59 = vadd.f32 0.5, %v653_v19 }
 0x112   :  { %v635_v20 = vpop.f32.mrf.mxu1  ;;  %v3438_v3 = vpop.eup %3437 }
 0x113   :  { %4498 = vst [vmem:[#allocation21_spill] sm:$0xff] %v3926_v60  ;;  %v644_v55 = vadd.f32 %v635_v20, %v294_v31  ;;  %v652_v34 = vmul.f32 0.5, %v3438_v3  ;;  %v659_v57 = vmul.f32 0.0, %v656_v59 }
 0x114   :  { %v637_v13 = vpop.f32.mrf.mxu1 }
 0x115   :  { %v645_v56 = vadd.f32 %v637_v13, %v296_v27  ;;  %v648_v11 = vmul.f32 0.5, %v644_v55  ;;  %v655_v54 = vadd.f32 0.5, %v652_v34  ;;  %v4499_v34 = vmov 0  }
 0x116   :  { %v639_v23 = vpop.f32.mrf.mxu1 }
 0x117   :  { %3439 = vtanh.f32 %v645_v56 }
 0x118   :  { %v640_v15 = vpop.f32.mrf.mxu1  ;;  %3441 = vtanh.f32 %v648_v11 }
 0x124   :  { %v3440_v62 = vpop.eup %3439 }
 0x125   :  { %v660_v60 = vmul.f32 %v3440_v62, %v655_v54  ;;  %v3442_v32 = vpop.eup %3441 }
 0x126   :  { %v654_v1 = vmul.f32 0.5, %v3442_v32 }
 0x127   :  { %v3928_v28 = vadd.f32 %v660_v60, %v659_v57 }
 0x128   :  { %v657_v25 = vadd.f32 0.5, %v654_v1 }
 0x129   :  { %3443 = vtanh.f32 %v3928_v28 }
 0x136   :  { %v3444_v36 = vpop.eup %3443 }
 0x137   :  { %v3931_v20 = vmul.f32 %v3444_v36, %v657_v25 }
 0x139   :  { %v669_v27 = vpack.c.bf16 %v3931_v20, %v3931_v20 }
 0x13b   :  { %895 = vmatmul.mubr.bf16.vlgmr.msra.gmra.mxu0 %v669_v27  ;;  %936 = vmatmul.mubr.bf16.vlgmr.msra.gmra.mxu1 %v669_v27 }
 0x13c   :  { %1165 = vmatpush1.bf16.msra.mxu0 %v3577_v4  ;;  %1206 = vmatpush1.bf16.msra.mxu1 %v3745_v38 }
 0x13d   :  { %1166 = vmatprep.subr.bf16.mxu0 %v3587_v6  ;;  %1207 = vmatprep.subr.bf16.mxu1 %v3750_v39 }
 0x13e   :  { %1196 = vmatprep.mubr.bf16.mxu0 %v4499_v34  ;;  %1237 = vmatprep.mubr.bf16.mxu1 %v4499_v34 }
 0x140   :  { %1167 = vmatpush1.bf16.msra.mxu0 %v3595_v8  ;;  %1208 = vmatpush1.bf16.msra.mxu1 %v3759_v40 }
 0x141   :  { %1168 = vmatprep.subr.bf16.mxu0 %v3604_v10  ;;  %1209 = vmatprep.subr.bf16.mxu1 %v3766_v41 }
 0x144   :  { %1169 = vmatpush1.bf16.msra.mxu0 %v3612_v12  ;;  %1210 = vmatpush1.bf16.msra.mxu1 %v3774_v42 }
 0x145   :  { %1170 = vmatprep.subr.bf16.mxu0 %v3622_v14  ;;  %1211 = vmatprep.subr.bf16.mxu1 %v3780_v43 }
 0x148   :  { %1171 = vmatpush1.bf16.msra.mxu0 %v3631_v16  ;;  %1212 = vmatpush1.bf16.msra.mxu1 %v3789_v44 }
 0x149   :  { %1172 = vmatprep.subr.bf16.mxu0 %v3640_v18  ;;  %1213 = vmatprep.subr.bf16.mxu1 %v3796_v45 }
 0x14c   :  { %1173 = vmatpush1.bf16.msra.mxu0 %v3652_v21  ;;  %1214 = vmatpush1.bf16.msra.mxu1 %v3804_v46 }
 0x14d   :  { %1174 = vmatprep.subr.bf16.mxu0 %v3658_v22  ;;  %1215 = vmatprep.subr.bf16.mxu1 %v3810_v47 }
 0x150   :  { %1175 = vmatpush1.bf16.msra.mxu0 %v3668_v24  ;;  %1216 = vmatpush1.bf16.msra.mxu1 %v3819_v48 }
 0x151   :  { %1176 = vmatprep.subr.bf16.mxu0 %v3678_v26  ;;  %1217 = vmatprep.subr.bf16.mxu1 %v3826_v49 }
 0x154   :  { %1177 = vmatpush1.bf16.msra.mxu0 %v3689_v29  ;;  %1218 = vmatpush1.bf16.msra.mxu1 %v3832_v50 }
 0x155   :  { %1178 = vmatprep.subr.bf16.mxu0 %v3695_v30  ;;  %1219 = vmatprep.subr.bf16.mxu1 %v3838_v51 }
 0x158   :  { %1179 = vmatpush1.bf16.msra.mxu0 %v3709_v33  ;;  %1220 = vmatpush1.bf16.msra.mxu1 %v3845_v52 }
 0x159   :  { %1507 = vmatprep.subr.bf16.mxu1 %v3719_v35 }
 0x1fb   :  { %v896_v4 = vpop.f32.mrf.mxu0  ;;  %v937_v6 = vpop.f32.mrf.mxu1 }
 0x1fc   :  { %v944_v8 = vadd.f32 %v896_v4, %v3872_v63  ;;  %v946_v30 = vadd.f32 %v937_v6, %v3900_v53 }
 0x1fd   :  { %v898_v10 = vpop.f32.mrf.mxu0  ;;  %v939_v12 = vpop.f32.mrf.mxu1 }
 0x1fe   :  { %v948_v14 = vmul.f32 0.5, %v944_v8  ;;  %v945_v16 = vadd.f32 %v898_v10, %v3874_v2  ;;  %v947_v24 = vadd.f32 %v939_v12, %v3902_v58  ;;  %v950_v33 = vmul.f32 0.5, %v946_v30  ;;  %v4500_v12 = vld [vmem:[#allocation14_spill] sm:$0xff] }
 0x1ff   :  { %v900_v18 = vpop.f32.mrf.mxu0  ;;  %v941_v21 = vpop.f32.mrf.mxu1 }
 0x200   :  { %3445 = vtanh.f32 %v948_v14  ;;  %v949_v22 = vmul.f32 0.5, %v945_v16 }
 0x201   :  { %v901_v26 = vpop.f32.mrf.mxu0  ;;  %v942_v29 = vpop.f32.mrf.mxu1 }
 0x202   :  { %3447 = vtanh.f32 %v949_v22 }
 0x203   :  { %3449 = vtanh.f32 %v947_v24 }
 0x204   :  { %3451 = vtanh.f32 %v950_v33 }
 0x20d   :  { %v3446_v35 = vpop.eup %3445 }
 0x20e   :  { %v954_v63 = vmul.f32 0.5, %v3446_v35 }
 0x20f   :  { %v3448_v62 = vpop.eup %3447 }
 0x210   :  { %v957_v60 = vadd.f32 0.5, %v954_v63  ;;  %v955_v13 = vmul.f32 0.5, %v3448_v62  ;;  %v3450_v2 = vpop.eup %3449 }
 0x211   :  { %v3452_v58 = vpop.eup %3451 }
 0x212   :  { %v958_v56 = vadd.f32 0.5, %v955_v13  ;;  %v962_v23 = vmul.f32 %v3450_v2, %v957_v60  ;;  %v956_v55 = vmul.f32 0.5, %v3452_v58  ;;  %v4127_v2 = vld [vmem:[%s4471_s2 + $0xec] ss:$16 sps:$4 sm:$0xff]   ;;  %v4156_v58 = vld [vmem:[%s4471_s2 + $0xa8] ss:$16 sps:$4 sm:$0xff]  }
 0x214   :  { %v961_v31 = vmul.f32 %v958_v56, %v3928_v28  ;;  %v959_v61 = vadd.f32 0.5, %v956_v55  ;;  %v4089_v28 = vld [vmem:[%s4471_s2] ss:$16 sps:$4 sm:$0xff]   ;;  %v4132_v56 = vld [vmem:[%s4471_s2 + $0xe8] ss:$16 sps:$4 sm:$0xff]  }
 0x215   :  { %v4163_v55 = vld [vmem:[%s4471_s2 + $0x8c] ss:$16 sps:$4 sm:$0xff]  }
 0x216   :  { %v3973_v15 = vadd.f32 %v962_v23, %v961_v31  ;;  %v4139_v23 = vld [vmem:[%s4471_s2 + $0xcc] ss:$16 sps:$4 sm:$0xff]   ;;  %v4144_v31 = vld [vmem:[%s4471_s2 + $0xc8] ss:$16 sps:$4 sm:$0xff]  }
 0x218   :  { %3453 = vtanh.f32 %v3973_v15 }
 0x225   :  { %v3454_v53 = vpop.eup %3453 }
 0x226   :  { %v3976_v3 = vmul.f32 %v3454_v53, %v959_v61  ;;  %v4168_v61 = vld [vmem:[%s4471_s2 + $0x88] ss:$16 sps:$4 sm:$0xff]   ;;  %v4173_v53 = vld [vmem:[%s4471_s2 + $0x6c] ss:$16 sps:$4 sm:$0xff]  }
 0x228   :  { %v971_v19 = vpack.c.bf16 %v3976_v3, %v3976_v3 }
 0x22a   :  { %1197 = vmatmul.mubr.bf16.vlgmr.msra.gmra.mxu0 %v971_v19  ;;  %1238 = vmatmul.mubr.bf16.vlgmr.msra.gmra.mxu1 %v971_v19  ;;  %v4180_v19 = vld [vmem:[%s4471_s2 + $0x68] ss:$16 sps:$4 sm:$0xff]  }
 0x22b   :  { %1508 = vmatpush1.bf16.msra.mxu1 %v3745_v38  ;;  %1498 = vmatprep.mubr.bf16.mxu0 %v4499_v34  ;;  %v4000_v38 = vld [vmem:[%s4471_s2 + $0xe4] ss:$16 sps:$4 sm:$0xff]  }
 0x22c   :  { %1509 = vmatprep.subr.bf16.mxu1 %v3750_v39  ;;  %1539 = vmatprep.mubr.bf16.mxu1 %v4499_v34  ;;  %v4005_v39 = vld [vmem:[%s4471_s2 + $0xe0] ss:$16 sps:$4 sm:$0xff]  }
 0x22d   :  { %1466 = vmatprep.subr.bf16.mxu0 %v4000_v38 }
 0x22e   :  { %1467 = vmatpush1.bf16.msra.mxu0 %v4005_v39 }
 0x22f   :  { %1510 = vmatpush1.bf16.msra.mxu1 %v3759_v40  ;;  %v4012_v40 = vld [vmem:[%s4471_s2 + $0xc4] ss:$16 sps:$4 sm:$0xff]  }
 0x230   :  { %1511 = vmatprep.subr.bf16.mxu1 %v3766_v41  ;;  %v4017_v41 = vld [vmem:[%s4471_s2 + $0xc0] ss:$16 sps:$4 sm:$0xff]   ;;  %1468 = vmatprep.subr.bf16.mxu0 %v4012_v40 }
 0x232   :  { %1469 = vmatpush1.bf16.msra.mxu0 %v4017_v41 }
 0x233   :  { %1512 = vmatpush1.bf16.msra.mxu1 %v3774_v42  ;;  %v4024_v42 = vld [vmem:[%s4471_s2 + $0xa4] ss:$16 sps:$4 sm:$0xff]  }
 0x234   :  { %1513 = vmatprep.subr.bf16.mxu1 %v3780_v43  ;;  %v4029_v43 = vld [vmem:[%s4471_s2 + $0xa0] ss:$16 sps:$4 sm:$0xff]   ;;  %1470 = vmatprep.subr.bf16.mxu0 %v4024_v42 }
 0x236   :  { %1471 = vmatpush1.bf16.msra.mxu0 %v4029_v43 }
 0x237   :  { %1514 = vmatpush1.bf16.msra.mxu1 %v3789_v44  ;;  %v4036_v44 = vld [vmem:[%s4471_s2 + $0x84] ss:$16 sps:$4 sm:$0xff]  }
 0x238   :  { %1515 = vmatprep.subr.bf16.mxu1 %v3796_v45  ;;  %v4041_v45 = vld [vmem:[%s4471_s2 + $0x80] ss:$16 sps:$4 sm:$0xff]   ;;  %1472 = vmatprep.subr.bf16.mxu0 %v4036_v44 }
 0x23a   :  { %1473 = vmatpush1.bf16.msra.mxu0 %v4041_v45 }
 0x23b   :  { %1516 = vmatpush1.bf16.msra.mxu1 %v3804_v46  ;;  %v4046_v46 = vld [vmem:[%s4471_s2 + $0x64] ss:$16 sps:$4 sm:$0xff]  }
 0x23c   :  { %1517 = vmatprep.subr.bf16.mxu1 %v3810_v47  ;;  %v4053_v47 = vld [vmem:[%s4471_s2 + $0x60] ss:$16 sps:$4 sm:$0xff]   ;;  %1474 = vmatprep.subr.bf16.mxu0 %v4046_v46 }
 0x23e   :  { %1475 = vmatpush1.bf16.msra.mxu0 %v4053_v47 }
 0x23f   :  { %1518 = vmatpush1.bf16.msra.mxu1 %v3819_v48  ;;  %v4059_v48 = vld [vmem:[%s4471_s2 + $0x44] ss:$16 sps:$4 sm:$0xff]  }
 0x240   :  { %1519 = vmatprep.subr.bf16.mxu1 %v3826_v49  ;;  %v4065_v49 = vld [vmem:[%s4471_s2 + $0x40] ss:$16 sps:$4 sm:$0xff]   ;;  %1476 = vmatprep.subr.bf16.mxu0 %v4059_v48 }
 0x242   :  { %1477 = vmatpush1.bf16.msra.mxu0 %v4065_v49 }
 0x243   :  { %1520 = vmatpush1.bf16.msra.mxu1 %v3832_v50  ;;  %v4071_v50 = vld [vmem:[%s4471_s2 + $0x24] ss:$16 sps:$4 sm:$0xff]  }
 0x244   :  { %1521 = vmatprep.subr.bf16.mxu1 %v3838_v51  ;;  %v4077_v51 = vld [vmem:[%s4471_s2 + $0x20] ss:$16 sps:$4 sm:$0xff]   ;;  %1478 = vmatprep.subr.bf16.mxu0 %v4071_v50 }
 0x246   :  { %1479 = vmatpush1.bf16.msra.mxu0 %v4077_v51 }
 0x247   :  { %1522 = vmatpush1.bf16.msra.mxu1 %v3845_v52  ;;  %v4083_v52 = vld [vmem:[%s4471_s2 + $0x4] ss:$16 sps:$4 sm:$0xff]  }
 0x248   :  { %1480 = vmatprep.subr.bf16.mxu0 %v4083_v52  ;;  %1809 = vmatprep.subr.bf16.mxu1 %v4127_v2 }
 0x24a   :  { %1481 = vmatpush1.bf16.msra.mxu0 %v4089_v28 }
 0x24b   :  { %1768 = vmatprep.subr.bf16.mxu0 %v4000_v38 }
 0x2ea   :  { %v1198_v11 = vpop.f32.mrf.mxu0  ;;  %v1239_v59 = vpop.f32.mrf.mxu1 }
 0x2eb   :  { %v1246_v54 = vadd.f32 %v1198_v11, %v3876_v5  ;;  %v1248_v14 = vadd.f32 %v1239_v59, %v4500_v12  ;;  %v4186_v11 = vld [vmem:[%s4471_s2 + $0x4c] ss:$16 sps:$4 sm:$0xff]   ;;  %v4192_v59 = vld [vmem:[%s4471_s2 + $0x48] ss:$16 sps:$4 sm:$0xff]  }
 0x2ec   :  { %v1200_v57 = vpop.f32.mrf.mxu0  ;;  %v1241_v32 = vpop.f32.mrf.mxu1  ;;  %v4502_v12 = vld [vmem:[#allocation5_spill] sm:$0xff] }
 0x2ed   :  { %v1250_v1 = vmul.f32 0.5, %v1246_v54  ;;  %v1247_v25 = vadd.f32 %v1200_v57, %v3878_v9  ;;  %v1249_v6 = vadd.f32 %v1241_v32, %v3906_v7  ;;  %v1252_v16 = vmul.f32 0.5, %v1248_v14  ;;  %v4198_v54 = vld [vmem:[%s4471_s2 + $0x2c] ss:$16 sps:$4 sm:$0xff]   ;;  %v4204_v57 = vld [vmem:[%s4471_s2 + $0x28] ss:$16 sps:$4 sm:$0xff]  }
 0x2ee   :  { %v1202_v36 = vpop.f32.mrf.mxu0  ;;  %v1243_v27 = vpop.f32.mrf.mxu1  ;;  %v4210_v32 = vld [vmem:[%s4471_s2 + $0xc] ss:$16 sps:$4 sm:$0xff]  }
 0x2ef   :  { %3455 = vtanh.f32 %v1250_v1  ;;  %v1251_v4 = vmul.f32 0.5, %v1247_v25  ;;  %v4216_v1 = vld [vmem:[%s4471_s2 + $0x8] ss:$16 sps:$4 sm:$0xff]   ;;  %v4501_v27 = vld [vmem:[#allocation4_spill] sm:$0xff] }
 0x2f0   :  { %v1203_v8 = vpop.f32.mrf.mxu0  ;;  %v1244_v10 = vpop.f32.mrf.mxu1 }
 0x2f1   :  { %3457 = vtanh.f32 %v1251_v4 }
 0x2f2   :  { %3459 = vtanh.f32 %v1249_v6 }
 0x2f3   :  { %3461 = vtanh.f32 %v1252_v16 }
 0x2fc   :  { %v3456_v18 = vpop.eup %3455 }
 0x2fd   :  { %v1256_v5 = vmul.f32 0.5, %v3456_v18 }
 0x2fe   :  { %v3458_v21 = vpop.eup %3457 }
 0x2ff   :  { %v1259_v22 = vadd.f32 0.5, %v1256_v5  ;;  %v1257_v24 = vmul.f32 0.5, %v3458_v21  ;;  %v3460_v9 = vpop.eup %3459  ;;  %v4503_v21 = vld [vmem:[#allocation16_spill] sm:$0xff] }
 0x300   :  { %v3462_v7 = vpop.eup %3461 }
 0x301   :  { %v1260_v26 = vadd.f32 0.5, %v1257_v24  ;;  %v1264_v29 = vmul.f32 %v3460_v9, %v1259_v22  ;;  %v1258_v35 = vmul.f32 0.5, %v3462_v7 }
 0x303   :  { %v1263_v30 = vmul.f32 %v1260_v26, %v3973_v15  ;;  %v1261_v63 = vadd.f32 0.5, %v1258_v35  ;;  %v4151_v15 = vld [vmem:[%s4471_s2 + $0xac] ss:$16 sps:$4 sm:$0xff]  }
 0x304   :  { %v4504_v26 = vld [vmem:[#allocation15_spill] sm:$0xff] }
 0x305   :  { %v4099_v33 = vadd.f32 %v1264_v29, %v1263_v30 }
 0x307   :  { %3463 = vtanh.f32 %v4099_v33 }
 0x314   :  { %v3464_v62 = vpop.eup %3463 }
 0x315   :  { %v4102_v60 = vmul.f32 %v3464_v62, %v1261_v63 }
 0x317   :  { %v1273_v13 = vpack.c.bf16 %v4102_v60, %v4102_v60 }
 0x319   :  { %1499 = vmatmul.mubr.bf16.vlgmr.msra.gmra.mxu0 %v1273_v13  ;;  %1540 = vmatmul.mubr.bf16.vlgmr.msra.gmra.mxu1 %v1273_v13 }
 0x31a   :  { %1769 = vmatpush1.bf16.msra.mxu0 %v4005_v39  ;;  %1800 = vmatprep.mubr.bf16.mxu0 %v4499_v34 }
 0x31b   :  { %1770 = vmatprep.subr.bf16.mxu0 %v4012_v40  ;;  %1841 = vmatprep.mubr.bf16.mxu1 %v4499_v34 }
 0x31c   :  { %1810 = vmatpush1.bf16.msra.mxu1 %v4132_v56 }
 0x31d   :  { %1811 = vmatprep.subr.bf16.mxu1 %v4139_v23 }
 0x31e   :  { %1771 = vmatpush1.bf16.msra.mxu0 %v4017_v41 }
 0x31f   :  { %1772 = vmatprep.subr.bf16.mxu0 %v4024_v42 }
 0x320   :  { %1812 = vmatpush1.bf16.msra.mxu1 %v4144_v31 }
 0x321   :  { %1813 = vmatprep.subr.bf16.mxu1 %v4151_v15 }
 0x322   :  { %1773 = vmatpush1.bf16.msra.mxu0 %v4029_v43 }
 0x323   :  { %1774 = vmatprep.subr.bf16.mxu0 %v4036_v44 }
 0x324   :  { %1814 = vmatpush1.bf16.msra.mxu1 %v4156_v58 }
 0x325   :  { %1815 = vmatprep.subr.bf16.mxu1 %v4163_v55 }
 0x326   :  { %1775 = vmatpush1.bf16.msra.mxu0 %v4041_v45 }
 0x327   :  { %1776 = vmatprep.subr.bf16.mxu0 %v4046_v46 }
 0x328   :  { %1816 = vmatpush1.bf16.msra.mxu1 %v4168_v61 }
 0x329   :  { %1817 = vmatprep.subr.bf16.mxu1 %v4173_v53 }
 0x32a   :  { %1777 = vmatpush1.bf16.msra.mxu0 %v4053_v47 }
 0x32b   :  { %1778 = vmatprep.subr.bf16.mxu0 %v4059_v48 }
 0x32c   :  { %1818 = vmatpush1.bf16.msra.mxu1 %v4180_v19 }
 0x32d   :  { %1819 = vmatprep.subr.bf16.mxu1 %v4186_v11 }
 0x32e   :  { %1779 = vmatpush1.bf16.msra.mxu0 %v4065_v49 }
 0x32f   :  { %1780 = vmatprep.subr.bf16.mxu0 %v4071_v50 }
 0x330   :  { %1820 = vmatpush1.bf16.msra.mxu1 %v4192_v59 }
 0x331   :  { %1821 = vmatprep.subr.bf16.mxu1 %v4198_v54 }
 0x332   :  { %1781 = vmatpush1.bf16.msra.mxu0 %v4077_v51 }
 0x333   :  { %1782 = vmatprep.subr.bf16.mxu0 %v4083_v52 }
 0x334   :  { %1822 = vmatpush1.bf16.msra.mxu1 %v4204_v57 }
 0x335   :  { %1823 = vmatprep.subr.bf16.mxu1 %v4210_v32 }
 0x336   :  { %1783 = vmatpush1.bf16.msra.mxu0 %v4089_v28 }
 0x337   :  { %2070 = vmatprep.subr.bf16.mxu0 %v4000_v38 }
 0x338   :  { %1824 = vmatpush1.bf16.msra.mxu1 %v4216_v1 }
 0x339   :  { %2111 = vmatprep.subr.bf16.mxu1 %v4127_v2 }
 0x3d9   :  { %v1500_v25 = vpop.f32.mrf.mxu0  ;;  %v1541_v36 = vpop.f32.mrf.mxu1 }
 0x3da   :  { %v1548_v4 = vadd.f32 %v1500_v25, %v4501_v27  ;;  %v1550_v29 = vadd.f32 %v1541_v36, %v4504_v26 }
 0x3db   :  { %v1502_v6 = vpop.f32.mrf.mxu0  ;;  %v1543_v8 = vpop.f32.mrf.mxu1 }
 0x3dc   :  { %v1552_v10 = vmul.f32 0.5, %v1548_v4  ;;  %v1549_v14 = vadd.f32 %v1502_v6, %v4502_v12  ;;  %v1551_v22 = vadd.f32 %v1543_v8, %v4503_v21  ;;  %v1554_v30 = vmul.f32 0.5, %v1550_v29  ;;  %v4505_v21 = vld [vmem:[#allocation6_spill] sm:$0xff]  ;;  %v4506_v29 = vld [vmem:[#allocation7_spill] sm:$0xff] }
 0x3dd   :  { %v1504_v16 = vpop.f32.mrf.mxu0  ;;  %v1545_v18 = vpop.f32.mrf.mxu1 }
 0x3de   :  { %3465 = vtanh.f32 %v1552_v10  ;;  %v1553_v5 = vmul.f32 0.5, %v1549_v14 }
 0x3df   :  { %v1505_v24 = vpop.f32.mrf.mxu0  ;;  %v1546_v9 = vpop.f32.mrf.mxu1 }
 0x3e0   :  { %3467 = vtanh.f32 %v1553_v5 }
 0x3e1   :  { %3469 = vtanh.f32 %v1551_v22 }
 0x3e2   :  { %3471 = vtanh.f32 %v1554_v30 }
 0x3eb   :  { %v3466_v7 = vpop.eup %3465 }
 0x3ec   :  { %v1558_v35 = vmul.f32 0.5, %v3466_v7 }
 0x3ed   :  { %v3468_v63 = vpop.eup %3467 }
 0x3ee   :  { %v1561_v62 = vadd.f32 0.5, %v1558_v35  ;;  %v1559_v13 = vmul.f32 0.5, %v3468_v63  ;;  %v3470_v25 = vpop.eup %3469 }
 0x3ef   :  { %v3472_v8 = vpop.eup %3471 }
 0x3f0   :  { %v1562_v27 = vadd.f32 0.5, %v1559_v13  ;;  %v1566_v4 = vmul.f32 %v3470_v25, %v1561_v62  ;;  %v1560_v12 = vmul.f32 0.5, %v3472_v8 }
 0x3f2   :  { %v1565_v6 = vmul.f32 %v1562_v27, %v4099_v33  ;;  %v1563_v14 = vadd.f32 0.5, %v1560_v12 }
 0x3f4   :  { %v4226_v10 = vadd.f32 %v1566_v4, %v1565_v6 }
 0x3f6   :  { %3473 = vtanh.f32 %v4226_v10 }
 0x403   :  { %v3474_v36 = vpop.eup %3473 }
 0x404   :  { %v4229_v16 = vmul.f32 %v3474_v36, %v1563_v14 }
 0x406   :  { %v1575_v18 = vpack.c.bf16 %v4229_v16, %v4229_v16 }
 0x408   :  { %1801 = vmatmul.mubr.bf16.vlgmr.msra.gmra.mxu0 %v1575_v18  ;;  %1842 = vmatmul.mubr.bf16.vlgmr.msra.gmra.mxu1 %v1575_v18 }
 0x409   :  { %2071 = vmatpush1.bf16.msra.mxu0 %v4005_v39  ;;  %2112 = vmatpush1.bf16.msra.mxu1 %v4132_v56 }
 0x40a   :  { %2072 = vmatprep.subr.bf16.mxu0 %v4012_v40  ;;  %2113 = vmatprep.subr.bf16.mxu1 %v4139_v23 }
 0x40b   :  { %2102 = vmatprep.mubr.bf16.mxu0 %v4499_v34  ;;  %2143 = vmatprep.mubr.bf16.mxu1 %v4499_v34 }
 0x40d   :  { %2073 = vmatpush1.bf16.msra.mxu0 %v4017_v41  ;;  %2114 = vmatpush1.bf16.msra.mxu1 %v4144_v31 }
 0x40e   :  { %2074 = vmatprep.subr.bf16.mxu0 %v4024_v42  ;;  %2115 = vmatprep.subr.bf16.mxu1 %v4151_v15 }
 0x411   :  { %2075 = vmatpush1.bf16.msra.mxu0 %v4029_v43  ;;  %2116 = vmatpush1.bf16.msra.mxu1 %v4156_v58 }
 0x412   :  { %2076 = vmatprep.subr.bf16.mxu0 %v4036_v44  ;;  %2117 = vmatprep.subr.bf16.mxu1 %v4163_v55 }
 0x415   :  { %2077 = vmatpush1.bf16.msra.mxu0 %v4041_v45  ;;  %2118 = vmatpush1.bf16.msra.mxu1 %v4168_v61 }
 0x416   :  { %2078 = vmatprep.subr.bf16.mxu0 %v4046_v46  ;;  %2119 = vmatprep.subr.bf16.mxu1 %v4173_v53 }
 0x419   :  { %2079 = vmatpush1.bf16.msra.mxu0 %v4053_v47  ;;  %2120 = vmatpush1.bf16.msra.mxu1 %v4180_v19 }
 0x41a   :  { %2080 = vmatprep.subr.bf16.mxu0 %v4059_v48  ;;  %2121 = vmatprep.subr.bf16.mxu1 %v4186_v11 }
 0x41d   :  { %2081 = vmatpush1.bf16.msra.mxu0 %v4065_v49  ;;  %2122 = vmatpush1.bf16.msra.mxu1 %v4192_v59 }
 0x41e   :  { %2082 = vmatprep.subr.bf16.mxu0 %v4071_v50  ;;  %2123 = vmatprep.subr.bf16.mxu1 %v4198_v54 }
 0x421   :  { %2083 = vmatpush1.bf16.msra.mxu0 %v4077_v51  ;;  %2124 = vmatpush1.bf16.msra.mxu1 %v4204_v57 }
 0x422   :  { %2084 = vmatprep.subr.bf16.mxu0 %v4083_v52  ;;  %2125 = vmatprep.subr.bf16.mxu1 %v4210_v32 }
 0x425   :  { %2085 = vmatpush1.bf16.msra.mxu0 %v4089_v28  ;;  %2126 = vmatpush1.bf16.msra.mxu1 %v4216_v1 }
 0x426   :  { %2372 = vmatprep.subr.bf16.mxu0 %v4000_v38  ;;  %2413 = vmatprep.subr.bf16.mxu1 %v4127_v2  ;;  %v4507_v38 = vld [vmem:[#allocation17_spill] sm:$0xff] }
 0x4c8   :  { %v1802_v33 = vpop.f32.mrf.mxu0  ;;  %v1843_v5 = vpop.f32.mrf.mxu1 }
 0x4c9   :  { %v1850_v22 = vadd.f32 %v1802_v33, %v4505_v21  ;;  %v1852_v27 = vadd.f32 %v1843_v5, %v4507_v38 }
 0x4ca   :  { %v1804_v24 = vpop.f32.mrf.mxu0  ;;  %v1845_v9 = vpop.f32.mrf.mxu1 }
 0x4cb   :  { %v1854_v26 = vmul.f32 0.5, %v1850_v22  ;;  %v1851_v30 = vadd.f32 %v1804_v24, %v4506_v29  ;;  %v1853_v62 = vadd.f32 %v1845_v9, %v3914_v37  ;;  %v1856_v4 = vmul.f32 0.5, %v1852_v27 }
 0x4cc   :  { %v1806_v7 = vpop.f32.mrf.mxu0  ;;  %v1847_v35 = vpop.f32.mrf.mxu1 }
 0x4cd   :  { %3475 = vtanh.f32 %v1854_v26  ;;  %v1855_v63 = vmul.f32 0.5, %v1851_v30 }
 0x4ce   :  { %v1807_v13 = vpop.f32.mrf.mxu0  ;;  %v1848_v25 = vpop.f32.mrf.mxu1 }
 0x4cf   :  { %3477 = vtanh.f32 %v1855_v63 }
 0x4d0   :  { %3479 = vtanh.f32 %v1853_v62 }
 0x4d1   :  { %3481 = vtanh.f32 %v1856_v4 }
 0x4da   :  { %v3476_v6 = vpop.eup %3475 }
 0x4db   :  { %v1860_v8 = vmul.f32 0.5, %v3476_v6 }
 0x4dc   :  { %v3478_v12 = vpop.eup %3477 }
 0x4dd   :  { %v1863_v14 = vadd.f32 0.5, %v1860_v8  ;;  %v1861_v36 = vmul.f32 0.5, %v3478_v12  ;;  %v3480_v18 = vpop.eup %3479 }
 0x4de   :  { %v3482_v37 = vpop.eup %3481 }
 0x4df   :  { %v1864_v33 = vadd.f32 0.5, %v1861_v36  ;;  %v1868_v21 = vmul.f32 %v3480_v18, %v1863_v14  ;;  %v1862_v9 = vmul.f32 0.5, %v3482_v37  ;;  %v3427_v18 = vld [vmem:[%s4474_s4 + $0x38] sm:$0xff]  }
 0x4e1   :  { %v1867_v22 = vmul.f32 %v1864_v33, %v4226_v10  ;;  %v1865_v26 = vadd.f32 0.5, %v1862_v9 }
 0x4e3   :  { %v4272_v24 = vadd.f32 %v1868_v21, %v1867_v22  ;;  %v4510_v22 = vld [vmem:[#allocation10_spill] sm:$0xff] }
 0x4e5   :  { %3483 = vtanh.f32 %v4272_v24 }
 0x4f2   :  { %v3484_v5 = vpop.eup %3483 }
 0x4f3   :  { %v4275_v29 = vmul.f32 %v3484_v5, %v1865_v26  ;;  %v4511_v5 = vld [vmem:[#allocation11_spill] sm:$0xff] }
 0x4f5   :  { %v1877_v30 = vpack.c.bf16 %v4275_v29, %v4275_v29 }
 0x4f7   :  { %2103 = vmatmul.mubr.bf16.vlgmr.msra.gmra.mxu0 %v1877_v30  ;;  %2144 = vmatmul.mubr.bf16.vlgmr.msra.gmra.mxu1 %v1877_v30 }
 0x4f8   :  { %2373 = vmatpush1.bf16.msra.mxu0 %v4005_v39  ;;  %2414 = vmatpush1.bf16.msra.mxu1 %v4132_v56 }
 0x4f9   :  { %2374 = vmatprep.subr.bf16.mxu0 %v4012_v40  ;;  %2415 = vmatprep.subr.bf16.mxu1 %v4139_v23 }
 0x4fa   :  { %2404 = vmatprep.mubr.bf16.mxu0 %v4499_v34  ;;  %2445 = vmatprep.mubr.bf16.mxu1 %v4499_v34 }
 0x4fc   :  { %2375 = vmatpush1.bf16.msra.mxu0 %v4017_v41  ;;  %2416 = vmatpush1.bf16.msra.mxu1 %v4144_v31  ;;  %v4508_v41 = vld [vmem:[#allocation8_spill] sm:$0xff] }
 0x4fd   :  { %2376 = vmatprep.subr.bf16.mxu0 %v4024_v42  ;;  %2417 = vmatprep.subr.bf16.mxu1 %v4151_v15 }
 0x500   :  { %2377 = vmatpush1.bf16.msra.mxu0 %v4029_v43  ;;  %2418 = vmatpush1.bf16.msra.mxu1 %v4156_v58 }
 0x501   :  { %2378 = vmatprep.subr.bf16.mxu0 %v4036_v44  ;;  %2419 = vmatprep.subr.bf16.mxu1 %v4163_v55 }
 0x504   :  { %2379 = vmatpush1.bf16.msra.mxu0 %v4041_v45  ;;  %2420 = vmatpush1.bf16.msra.mxu1 %v4168_v61 }
 0x505   :  { %2380 = vmatprep.subr.bf16.mxu0 %v4046_v46  ;;  %2421 = vmatprep.subr.bf16.mxu1 %v4173_v53  ;;  %v4509_v46 = vld [vmem:[#allocation9_spill] sm:$0xff] }
 0x508   :  { %2381 = vmatpush1.bf16.msra.mxu0 %v4053_v47  ;;  %2422 = vmatpush1.bf16.msra.mxu1 %v4180_v19 }
 0x509   :  { %2382 = vmatprep.subr.bf16.mxu0 %v4059_v48  ;;  %2423 = vmatprep.subr.bf16.mxu1 %v4186_v11 }
 0x50c   :  { %2383 = vmatpush1.bf16.msra.mxu0 %v4065_v49  ;;  %2424 = vmatpush1.bf16.msra.mxu1 %v4192_v59 }
 0x50d   :  { %2384 = vmatprep.subr.bf16.mxu0 %v4071_v50  ;;  %2425 = vmatprep.subr.bf16.mxu1 %v4198_v54 }
 0x510   :  { %2385 = vmatpush1.bf16.msra.mxu0 %v4077_v51  ;;  %2426 = vmatpush1.bf16.msra.mxu1 %v4204_v57 }
 0x511   :  { %2386 = vmatprep.subr.bf16.mxu0 %v4083_v52  ;;  %2427 = vmatprep.subr.bf16.mxu1 %v4210_v32 }
 0x514   :  { %2387 = vmatpush1.bf16.msra.mxu0 %v4089_v28  ;;  %2428 = vmatpush1.bf16.msra.mxu1 %v4216_v1 }
 0x515   :  { %2715 = vmatprep.subr.bf16.mxu1 %v4127_v2 }
 0x5b7   :  { %v2104_v39 = vpop.f32.mrf.mxu0  ;;  %v2145_v40 = vpop.f32.mrf.mxu1 }
 0x5b8   :  { %v2152_v42 = vadd.f32 %v2104_v39, %v4508_v41  ;;  %v2154_v2 = vadd.f32 %v2145_v40, %v3916_v17 }
 0x5b9   :  { %v2106_v43 = vpop.f32.mrf.mxu0  ;;  %v2147_v44 = vpop.f32.mrf.mxu1 }
 0x5ba   :  { %v2156_v45 = vmul.f32 0.5, %v2152_v42  ;;  %v2153_v47 = vadd.f32 %v2106_v43, %v4509_v46  ;;  %v2155_v51 = vadd.f32 %v2147_v44, %v3918_v0  ;;  %v2158_v10 = vmul.f32 0.5, %v2154_v2  ;;  %v4512_v42 = vld [vmem:[#allocation19_spill] sm:$0xff]  ;;  %v4513_v46 = vld [vmem:[#allocation18_spill] sm:$0xff] }
 0x5bb   :  { %v2108_v48 = vpop.f32.mrf.mxu0  ;;  %v2149_v49 = vpop.f32.mrf.mxu1 }
 0x5bc   :  { %3485 = vtanh.f32 %v2156_v45  ;;  %v2157_v50 = vmul.f32 0.5, %v2153_v47 }
 0x5bd   :  { %v2109_v52 = vpop.f32.mrf.mxu0  ;;  %v2150_v28 = vpop.f32.mrf.mxu1 }
 0x5be   :  { %3487 = vtanh.f32 %v2157_v50 }
 0x5bf   :  { %3489 = vtanh.f32 %v2155_v51 }
 0x5c0   :  { %3491 = vtanh.f32 %v2158_v10 }
 0x5c9   :  { %v3486_v7 = vpop.eup %3485 }
 0x5ca   :  { %v2162_v35 = vmul.f32 0.5, %v3486_v7 }
 0x5cb   :  { %v3488_v63 = vpop.eup %3487 }
 0x5cc   :  { %v2165_v62 = vadd.f32 0.5, %v2162_v35  ;;  %v2163_v13 = vmul.f32 0.5, %v3488_v63  ;;  %v3490_v25 = vpop.eup %3489 }
 0x5cd   :  { %v3492_v0 = vpop.eup %3491 }
 0x5ce   :  { %v2166_v38 = vadd.f32 0.5, %v2163_v13  ;;  %v2170_v27 = vmul.f32 %v3490_v25, %v2165_v62  ;;  %v2164_v8 = vmul.f32 0.5, %v3492_v0  ;;  %v3428_v0 = vld [vmem:[%s4474_s4 + $0x30] sm:$0xff]  }
 0x5d0   :  { %v2169_v4 = vmul.f32 %v2166_v38, %v4272_v24  ;;  %v2167_v12 = vadd.f32 0.5, %v2164_v8  ;;  %v3429_v8 = vld [vmem:[%s4474_s4 + $0x28] sm:$0xff]  }
 0x5d2   :  { %v4317_v6 = vadd.f32 %v2170_v27, %v2169_v4 }
 0x5d4   :  { %3493 = vtanh.f32 %v4317_v6 }
 0x5e1   :  { %v3494_v17 = vpop.eup %3493 }
 0x5e2   :  { %v4320_v14 = vmul.f32 %v3494_v17, %v2167_v12  ;;  %v3430_v12 = vld [vmem:[%s4474_s4 + $0x20] sm:$0xff]   ;;  %v3433_v17 = vld [vmem:[%s4474_s4 + $0x8] sm:$0xff]  }
 0x5e4   :  { %v2179_v36 = vpack.c.bf16 %v4320_v14, %v4320_v14 }
 0x5e6   :  { %2405 = vmatmul.mubr.bf16.vlgmr.msra.gmra.mxu0 %v2179_v36  ;;  %2446 = vmatmul.mubr.bf16.vlgmr.msra.gmra.mxu1 %v2179_v36  ;;  %v3434_v36 = vld [vmem:[%s4474_s4] sm:$0xff]  }
 0x5e7   :  { %2716 = vmatpush1.bf16.msra.mxu1 %v4132_v56  ;;  %2706 = vmatprep.mubr.bf16.mxu0 %v4499_v34  ;;  %v3403_v56 = vld [vmem:[%s4471_s2 + $0xe0] ss:$16 sps:$4 sm:$0xff]  }
 0x5e8   :  { %2717 = vmatprep.subr.bf16.mxu1 %v4139_v23  ;;  %2747 = vmatprep.mubr.bf16.mxu1 %v4499_v34  ;;  %v3405_v34 = vld [vmem:[%s4471_s2 + $0xe4] ss:$16 sps:$4 sm:$0xff]  }
 0x5e9   :  { %2674 = vmatprep.subr.bf16.mxu0 %v3405_v34  ;;  %v3408_v23 = vld [vmem:[%s4471_s2 + $0xc4] ss:$16 sps:$4 sm:$0xff]   ;;  %v2790_v34 = vpack.c.bf16 %v4229_v16, %v4102_v60 }
 0x5ea   :  { %2675 = vmatpush1.bf16.msra.mxu0 %v3403_v56  ;;  %v2791_v56 = vpack.c.bf16 %v4320_v14, %v4275_v29  ;;  %v4517_v29 = vld [vmem:[#allocation20_spill] sm:$0xff] }
 0x5eb   :  { %2718 = vmatpush1.bf16.msra.mxu1 %v4144_v31  ;;  %v3406_v31 = vld [vmem:[%s4471_s2 + $0xc0] ss:$16 sps:$4 sm:$0xff]   ;;  %2676 = vmatprep.subr.bf16.mxu0 %v3408_v23 }
 0x5ec   :  { %2719 = vmatprep.subr.bf16.mxu1 %v4151_v15  ;;  %v3411_v15 = vld [vmem:[%s4471_s2 + $0xa4] ss:$16 sps:$4 sm:$0xff]  }
 0x5ee   :  { %2677 = vmatpush1.bf16.msra.mxu0 %v3406_v31 }
 0x5ef   :  { %2720 = vmatpush1.bf16.msra.mxu1 %v4156_v58  ;;  %v3409_v58 = vld [vmem:[%s4471_s2 + $0xa0] ss:$16 sps:$4 sm:$0xff]   ;;  %2678 = vmatprep.subr.bf16.mxu0 %v3411_v15 }
 0x5f0   :  { %2721 = vmatprep.subr.bf16.mxu1 %v4163_v55  ;;  %v3414_v55 = vld [vmem:[%s4471_s2 + $0x84] ss:$16 sps:$4 sm:$0xff]  }
 0x5f1   :  { %v4514_v15 = vld [vmem:[#allocation12_spill] sm:$0xff] }
 0x5f2   :  { %2679 = vmatpush1.bf16.msra.mxu0 %v3409_v58 }
 0x5f3   :  { %2722 = vmatpush1.bf16.msra.mxu1 %v4168_v61  ;;  %v3412_v61 = vld [vmem:[%s4471_s2 + $0x80] ss:$16 sps:$4 sm:$0xff]   ;;  %2680 = vmatprep.subr.bf16.mxu0 %v3414_v55 }
 0x5f4   :  { %2723 = vmatprep.subr.bf16.mxu1 %v4173_v53  ;;  %v3417_v53 = vld [vmem:[%s4471_s2 + $0x64] ss:$16 sps:$4 sm:$0xff]  }
 0x5f6   :  { %2681 = vmatpush1.bf16.msra.mxu0 %v3412_v61 }
 0x5f7   :  { %2724 = vmatpush1.bf16.msra.mxu1 %v4180_v19  ;;  %v3415_v19 = vld [vmem:[%s4471_s2 + $0x60] ss:$16 sps:$4 sm:$0xff]   ;;  %2682 = vmatprep.subr.bf16.mxu0 %v3417_v53 }
 0x5f8   :  { %2725 = vmatprep.subr.bf16.mxu1 %v4186_v11  ;;  %v3420_v11 = vld [vmem:[%s4471_s2 + $0x44] ss:$16 sps:$4 sm:$0xff]  }
 0x5fa   :  { %2683 = vmatpush1.bf16.msra.mxu0 %v3415_v19  ;;  %v4515_v19 = vld [vmem:[#allocation13_spill] sm:$0xff] }
 0x5fb   :  { %2726 = vmatpush1.bf16.msra.mxu1 %v4192_v59  ;;  %v3418_v59 = vld [vmem:[%s4471_s2 + $0x40] ss:$16 sps:$4 sm:$0xff]   ;;  %2684 = vmatprep.subr.bf16.mxu0 %v3420_v11 }
 0x5fc   :  { %2727 = vmatprep.subr.bf16.mxu1 %v4198_v54  ;;  %v3423_v54 = vld [vmem:[%s4471_s2 + $0x24] ss:$16 sps:$4 sm:$0xff]  }
 0x5fe   :  { %2685 = vmatpush1.bf16.msra.mxu0 %v3418_v59 }
 0x5ff   :  { %2728 = vmatpush1.bf16.msra.mxu1 %v4204_v57  ;;  %v3421_v57 = vld [vmem:[%s4471_s2 + $0x20] ss:$16 sps:$4 sm:$0xff]   ;;  %2686 = vmatprep.subr.bf16.mxu0 %v3423_v54 }
 0x600   :  { %2729 = vmatprep.subr.bf16.mxu1 %v4210_v32  ;;  %v3426_v32 = vld [vmem:[%s4471_s2 + $0x4] ss:$16 sps:$4 sm:$0xff]  }
 0x602   :  { %2687 = vmatpush1.bf16.msra.mxu0 %v3421_v57 }
 0x603   :  { %2730 = vmatpush1.bf16.msra.mxu1 %v4216_v1  ;;  %v3424_v1 = vld [vmem:[%s4471_s2] ss:$16 sps:$4 sm:$0xff]   ;;  %2688 = vmatprep.subr.bf16.mxu0 %v3426_v32  ;;  %v4516_v32 = vld [vmem:[#allocation21_spill] sm:$0xff] }
 0x606   :  { %2689 = vmatpush1.bf16.msra.mxu0 %v3424_v1 }
 0x607   :  { %3254 = vmatprep.subr.bf16.mxu0 %v3427_v18 }
 0x6a6   :  { %v2406_v33 = vpop.f32.mrf.mxu0  ;;  %v2447_v21 = vpop.f32.mrf.mxu1 }
 0x6a7   :  { %v2454_v24 = vadd.f32 %v2406_v33, %v4510_v22  ;;  %v2456_v47 = vadd.f32 %v2447_v21, %v4513_v46 }
 0x6a8   :  { %v2408_v37 = vpop.f32.mrf.mxu0  ;;  %v2449_v9 = vpop.f32.mrf.mxu1 }
 0x6a9   :  { %v2458_v26 = vmul.f32 0.5, %v2454_v24  ;;  %v2455_v30 = vadd.f32 %v2408_v37, %v4511_v5  ;;  %v2457_v43 = vadd.f32 %v2449_v9, %v4512_v42  ;;  %v2460_v48 = vmul.f32 0.5, %v2456_v47 }
 0x6aa   :  { %v2410_v39 = vpop.f32.mrf.mxu0  ;;  %v2451_v40 = vpop.f32.mrf.mxu1 }
 0x6ab   :  { %3495 = vtanh.f32 %v2458_v26  ;;  %v2459_v41 = vmul.f32 0.5, %v2455_v30  ;;  %v3233_v40 = vld [vmem:[%s4476_s5] ss:$0 sm:$0xff] }
 0x6ac   :  { %v2411_v44 = vpop.f32.mrf.mxu0  ;;  %v2452_v45 = vpop.f32.mrf.mxu1 }
 0x6ad   :  { %3497 = vtanh.f32 %v2459_v41 }
 0x6ae   :  { %3499 = vtanh.f32 %v2457_v43 }
 0x6af   :  { %3501 = vtanh.f32 %v2460_v48 }
 0x6b8   :  { %v3496_v49 = vpop.eup %3495 }
 0x6b9   :  { %v2464_v50 = vmul.f32 0.5, %v3496_v49 }
 0x6ba   :  { %v3498_v51 = vpop.eup %3497 }
 0x6bb   :  { %v2467_v52 = vadd.f32 0.5, %v2464_v50  ;;  %v2465_v28 = vmul.f32 0.5, %v3498_v51  ;;  %v3500_v2 = vpop.eup %3499 }
 0x6bc   :  { %v3502_v62 = vpop.eup %3501 }
 0x6bd   :  { %v2468_v10 = vadd.f32 0.5, %v2465_v28  ;;  %v2472_v7 = vmul.f32 %v3500_v2, %v2467_v52  ;;  %v2466_v13 = vmul.f32 0.5, %v3502_v62 }
 0x6bf   :  { %v2471_v35 = vmul.f32 %v2468_v10, %v4317_v6  ;;  %v2469_v25 = vadd.f32 0.5, %v2466_v13  ;;  %v2789_v6 = vpack.c.bf16 %v3976_v3, %v3931_v20  ;;  %v3431_v20 = vld [vmem:[%s4474_s4 + $0x18] sm:$0xff]   ;;  %v3432_v3 = vld [vmem:[%s4474_s4 + $0x10] sm:$0xff]  }
 0x6c1   :  { %v4397_v63 = vadd.f32 %v2472_v7, %v2471_v35 }
 0x6c3   :  { %3503 = vtanh.f32 %v4397_v63 }
 0x6d0   :  { %v3504_v38 = vpop.eup %3503 }
 0x6d1   :  { %v4400_v27 = vmul.f32 %v3504_v38, %v2469_v25 }
 0x6d3   :  { %v2481_v4 = vpack.c.bf16 %v4400_v27, %v4400_v27 }
 0x6d5   :  { %2707 = vmatmul.mubr.bf16.vlgmr.msra.gmra.mxu0 %v2481_v4  ;;  %2748 = vmatmul.mubr.bf16.vlgmr.msra.gmra.mxu1 %v2481_v4 }
 0x6d6   :  { %3255 = vmatpush3.bf16.msra.mxu0 %v3427_v18  ;;  %3270 = vmatprep.mubr.bf16.mxu0 %v2789_v6 }
 0x6d7   :  { %3256 = vmatprep.subr.bf16.mxu0 %v3428_v0 }
 0x6da   :  { %3257 = vmatpush3.bf16.msra.mxu0 %v3428_v0 }
 0x6db   :  { %3258 = vmatprep.subr.bf16.mxu0 %v3429_v8 }
 0x6de   :  { %3259 = vmatpush3.bf16.msra.mxu0 %v3429_v8 }
 0x6df   :  { %3260 = vmatprep.subr.bf16.mxu0 %v3430_v12 }
 0x6e2   :  { %3261 = vmatpush3.bf16.msra.mxu0 %v3430_v12 }
 0x6e3   :  { %3262 = vmatprep.subr.bf16.mxu0 %v3431_v20 }
 0x6e6   :  { %3263 = vmatpush3.bf16.msra.mxu0 %v3431_v20 }
 0x6e7   :  { %3264 = vmatprep.subr.bf16.mxu0 %v3432_v3 }
 0x6ea   :  { %3265 = vmatpush3.bf16.msra.mxu0 %v3432_v3 }
 0x6eb   :  { %3266 = vmatprep.subr.bf16.mxu0 %v3433_v17 }
 0x6ee   :  { %3267 = vmatpush3.bf16.msra.mxu0 %v3433_v17 }
 0x6ef   :  { %3268 = vmatprep.subr.bf16.mxu0 %v3434_v36 }
 0x6f2   :  { %3269 = vmatpush3.bf16.msra.mxu0 %v3434_v36 }
 0x6f5   :  { %3271 = vmatmul.mubr.bf16.vlgmr.msra.gmra.mxu0 %v2790_v34 }
 0x6f6   :  { %3274 = vmatprep.mubr.bf16.mxu0 %v2791_v56 }
 0x795   :  { %v2708_v23 = vpop.f32.mrf.mxu0  ;;  %v2749_v31 = vpop.f32.mrf.mxu1 }
 0x796   :  { %v2756_v58 = vadd.f32 %v2708_v23, %v4514_v15  ;;  %v2758_v14 = vadd.f32 %v2749_v31, %v4517_v29 }
 0x797   :  { %v2710_v55 = vpop.f32.mrf.mxu0  ;;  %v2751_v61 = vpop.f32.mrf.mxu1 }
 0x798   :  { %v2760_v53 = vmul.f32 0.5, %v2756_v58  ;;  %v2757_v11 = vadd.f32 %v2710_v55, %v4515_v19  ;;  %v2759_v60 = vadd.f32 %v2751_v61, %v4516_v32  ;;  %v2762_v18 = vmul.f32 0.5, %v2758_v14 }
 0x799   :  { %v2712_v59 = vpop.f32.mrf.mxu0  ;;  %v2753_v54 = vpop.f32.mrf.mxu1 }
 0x79a   :  { %3505 = vtanh.f32 %v2760_v53  ;;  %v2761_v57 = vmul.f32 0.5, %v2757_v11 }
 0x79b   :  { %v2713_v16 = vpop.f32.mrf.mxu0  ;;  %v2754_v1 = vpop.f32.mrf.mxu1 }
 0x79c   :  { %3507 = vtanh.f32 %v2761_v57 }
 0x79d   :  { %3509 = vtanh.f32 %v2759_v60 }
 0x79e   :  { %3511 = vtanh.f32 %v2762_v18 }
 0x7a7   :  { %v3506_v33 = vpop.eup %3505 }
 0x7a8   :  { %v2766_v21 = vmul.f32 0.5, %v3506_v33 }
 0x7a9   :  { %v3508_v22 = vpop.eup %3507 }
 0x7aa   :  { %v2769_v24 = vadd.f32 0.5, %v2766_v21  ;;  %v2767_v37 = vmul.f32 0.5, %v3508_v22  ;;  %v3510_v9 = vpop.eup %3509 }
 0x7ab   :  { %v3512_v43 = vpop.eup %3511 }
 0x7ac   :  { %v2770_v26 = vadd.f32 0.5, %v2767_v37  ;;  %v2774_v5 = vmul.f32 %v3510_v9, %v2769_v24  ;;  %v2768_v47 = vmul.f32 0.5, %v3512_v43 }
 0x7ae   :  { %v2773_v30 = vmul.f32 %v2770_v26, %v4397_v63  ;;  %v2771_v51 = vadd.f32 0.5, %v2768_v47 }
 0x7b0   :  { %v2775_v39 = vadd.f32 %v2774_v5, %v2773_v30 }
 0x7b2   :  { %3513 = vtanh.f32 %v2775_v39  ;;  %2780 = vst [vmem:[%s4475_s8] sm:$0xff] %v2775_v39 }
 0x7b5   :  { %v3272_v41 = vpop.f32.mrf.mxu0 }
 0x7b6   :  { %v2907_v42 = vadd.f32 %v3272_v41, %v3233_v40 }
 0x7b7   :  { %v2898_v44 = vpop.f32.mrf.mxu0 }
 0x7b8   :  { %2931 = vst [vmem:[%s4477_s6 + $0x10] sm:$0xff] %v2907_v42  ;;  %v2899_v45 = vadd.f32 %v3233_v40, %v2898_v44 }
 0x7b9   :  { %v3273_v46 = vpop.f32.mrf.mxu0 }
 0x7ba   :  { %2929 = vst [vmem:[%s4477_s6] sm:$0xff] %v2899_v45  ;;  %v2910_v48 = vadd.f32 %v3273_v46, %v3233_v40 }
 0x7bb   :  { %v2901_v49 = vpop.f32.mrf.mxu0 }
 0x7bc   :  { %2932 = vst [vmem:[%s4477_s6 + $0x18] sm:$0xff] %v2910_v48  ;;  %v2902_v50 = vadd.f32 %v3233_v40, %v2901_v49 }
 0x7be   :  { %2930 = vst [vmem:[%s4477_s6 + $0x8] sm:$0xff] %v2902_v50 }
 0x7bf   :  { %v3514_v52 = vpop.eup %3513 }
 0x7c0   :  { %v2777_v28 = vmul.f32 %v3514_v52, %v2771_v51 }
 0x7c2   :  { %2779 = vst [vmem:[%s4478_s7] sm:$0xff] %v2777_v28  ;;  %v2792_v2 = vpack.c.bf16 %v2777_v28, %v4400_v27 }
 0x7c4   :  { %3275 = vmatmul.mubr.bf16.gmra.mxu0 %v2792_v2 }
 0x884   :  { %v3276_v10 = vpop.f32.mrf.mxu0 }
 0x885   :  { %v2923_v7 = vadd.f32 %v3276_v10, %v3233_v40 }
 0x886   :  { %v2914_v35 = vpop.f32.mrf.mxu0 }
 0x887   :  { %2935 = vst [vmem:[%s4477_s6 + $0x30] sm:$0xff] %v2923_v7  ;;  %v2915_v63 = vadd.f32 %v3233_v40, %v2914_v35 }
 0x888   :  { %v3277_v62 = vpop.f32.mrf.mxu0 }
 0x889   :  { %2933 = vst [vmem:[%s4477_s6 + $0x20] sm:$0xff] %v2915_v63  ;;  %v2926_v13 = vadd.f32 %v3277_v62, %v3233_v40 }
 0x88a   :  { %v2917_v25 = vpop.f32.mrf.mxu0 }
 0x88b   :  { %2936 = vst [vmem:[%s4477_s6 + $0x38] sm:$0xff] %v2926_v13  ;;  %v2918_v38 = vadd.f32 %v3233_v40, %v2917_v25 }
 0x88d   :  { %2934 = vst [vmem:[%s4477_s6 + $0x28] sm:$0xff] %v2918_v38 }

</bundles_post_ra>
